<compile_context>
chip_gen: v7x
topology: tpu7x:2x2x1
jax: 0.10.0
libtpu: 0.0.40
codegen_flags: <defaults>
</compile_context>

<pallas_src>
import functools

import jax
import jax.numpy as jnp
from jax import lax
from jax.experimental import pallas as pl
from jax.experimental.pallas import tpu as pltpu

# Matmul-operand dtype (accumulation is always f32).  bf16 per the perf review
# (v6e/v7x MXU peak, halved weight DMA/VMEM); jnp.float32 restores exact f32
# parity with the PyTorch reference.
MXU_DTYPE = jnp.bfloat16


# ----------------------------------------------------------------------------
# Head-aligned feature padding helpers (wrapper-side, done once).
# ----------------------------------------------------------------------------
def _head_pad_last(a, num_heads, hs, hsp):
    """Permute+zero-pad the last (feature) axis from num_heads*hs to num_heads*hsp."""
    lead = a.shape[:-1]
    a = a.reshape(lead + (num_heads, hs))
    a = jnp.pad(a, [(0, 0)] * (a.ndim - 1) + [(0, hsp - hs)])
    return a.reshape(lead + (num_heads * hsp,))


def _head_pad_mat(w, num_heads, hs, hsp):
    """Pad a (D_in, D_out) matrix (y = x @ w layout) on both axes."""
    w = _head_pad_last(w, num_heads, hs, hsp)        # output dim
    w = _head_pad_last(w.T, num_heads, hs, hsp).T    # input dim
    return w


# ----------------------------------------------------------------------------
# Fused Pallas kernel: all blocks + final layernorm + logits for one batch tile.
# ----------------------------------------------------------------------------
def mgsasrec_kernel(seqs_ref, posk_ref, posv_ref, pos_ref, neg_ref,
                    w_ref, vec_ref, last_ref, out_ref,
                    *, num_blocks, num_heads, d_real):
    Bb, T, Dp = seqs_ref.shape
    R = Bb * T
    hsp = Dp // num_heads            # padded (lane-aligned) head size
    hs = d_real // num_heads         # real head size (softmax scale, LN stats)
    mxu_dtype = w_ref.dtype

    inv_d = jnp.float32(1.0 / d_real)
    eps = jnp.float32(1e-8)

    # Mask of real (non-padded) feature lanes -- only the LN stats need it.
    lane = lax.broadcasted_iota(jnp.int32, (1, Dp), 1)
    feat_mask = jnp.zeros((1, Dp), jnp.float32)
    for h in range(num_heads):
        lo = h * hsp
        feat_mask = feat_mask + jnp.where((lane >= lo) & (lane < lo + hs),
                                          1.0, 0.0)

    def layernorm(x, gamma, beta):
        # PyTorch LayerNorm: biased variance over the REAL D dims, eps in sqrt.
        mean = jnp.sum(x, axis=-1, keepdims=True) * inv_d
        diff = (x - mean) * feat_mask
        var = jnp.sum(diff * diff, axis=-1, keepdims=True) * inv_d
        return diff * lax.rsqrt(var + eps) * gamma + beta

    def mm(a, w):                     # MXU matmul: bf16 operands, f32 accum
        return jnp.dot(a.astype(mxu_dtype), w,
                       preferred_element_type=jnp.float32)

    x = seqs_ref[...].reshape(R, Dp)          # flattened batch*time rows (f32)
    posk = posk_ref[...]                      # (T, Dp) abs-pos K embedding
    posv = posv_ref[...]                      # (T, Dp) abs-pos V embedding

    # Additive causal bias, built ONCE and reused by every block & head.
    row = lax.broadcasted_iota(jnp.int32, (T, T), 0)
    col = lax.broadcasted_iota(jnp.int32, (T, T), 1)
    neg_big = jnp.float32(-2.0 ** 32 + 1)
    causal_bias = jnp.where(col > row, neg_big, jnp.float32(0.0))[None, :, :]

    scale = jnp.float32(1.0 / (hs ** 0.5))

    for i in range(num_blocks):               # static & small -> unrolled
        vec = vec_ref[i]                      # (9, Dp) packed per-block vectors
        ln1_g, ln1_b = vec[0:1], vec[1:2]
        q_b, k_b, v_b = vec[2:3], vec[3:4], vec[4:5]
        ln2_g, ln2_b = vec[5:6], vec[6:7]
        b1, b2 = vec[7:8], vec[8:9]

        # --- attention layernorm (queries + residual base) ------------------
        q_in = layernorm(x, ln1_g, ln1_b)

        # --- Q / K / V projections: wide-M GEMMs over (R, Dp) rows ----------
        Q = mm(q_in, w_ref[i, 0]) + q_b
        K = mm(x,    w_ref[i, 1]) + k_b
        V = mm(x,    w_ref[i, 2]) + v_b

        # Fold abs-pos terms:  Q@K.T + Q@posK.T == Q@(K+posK).T  (same for V).
        Qc = Q.reshape(Bb, T, Dp).astype(mxu_dtype)
        Kc = (K.reshape(Bb, T, Dp) + posk[None]).astype(mxu_dtype)
        Vc = (V.reshape(Bb, T, Dp) + posv[None]).astype(mxu_dtype)

        # --- per-head attention, heads = disjoint lane-tile-aligned chunks --
        head_outs = []
        for h in range(num_heads):
            sl = slice(h * hsp, (h + 1) * hsp)
            sc = jnp.einsum('bqd,bkd->bqk', Qc[:, :, sl], Kc[:, :, sl],
                            preferred_element_type=jnp.float32) * scale
            sc = sc + causal_bias
            sc = sc - jnp.max(sc, axis=-1, keepdims=True)
            e = jnp.exp(sc)
            attn = e / jnp.sum(e, axis=-1, keepdims=True)     # exact softmax
            head_outs.append(
                jnp.einsum('bqk,bkd->bqd', attn.astype(mxu_dtype),
                           Vc[:, :, sl], preferred_element_type=jnp.float32))
        mha = jnp.concatenate(head_outs, axis=-1).reshape(R, Dp)

        # --- residual + forward layernorm -----------------------------------
        s1 = layernorm(q_in + mha, ln2_g, ln2_b)

        # --- pointwise FFN (conv1d k=1 == per-position linear) + residual ---
        h1 = jnp.maximum(mm(s1, w_ref[i, 3]) + b1, 0.0)
        x = mm(h1, w_ref[i, 4]) + b2 + s1

    # --- final layernorm + pos/neg logits, lane-dense (1, 2, R) store --------
    last = last_ref[...]
    feats = layernorm(x, last[0:1], last[1:2])
    pos_l = jnp.sum(feats * pos_ref[...].reshape(R, Dp), axis=-1, keepdims=True)
    neg_l = jnp.sum(feats * neg_ref[...].reshape(R, Dp), axis=-1, keepdims=True)
    out_ref[0] = jnp.transpose(jnp.concatenate([pos_l, neg_l], axis=-1))  # (2,R)


# ----------------------------------------------------------------------------
# Wrapper: embedding gathers in plain JAX (glue), everything else in Pallas.
# ----------------------------------------------------------------------------
def mgsasrec_forward(packed, log_seqs, pos_seqs, neg_seqs, *, num_heads, d_real):
    item_emb = packed["item_emb"]                  # (item_num+1, Dp), head-padded
    Dp = item_emb.shape[1]
    B, T = log_seqs.shape
    num_blocks = packed["w_stack"].shape[0]

    seqs = item_emb[log_seqs] * jnp.float32(d_real ** 0.5)     # (B, T, Dp)
    pos_embs = item_emb[pos_seqs]
    neg_embs = item_emb[neg_seqs]
    posk = packed["abs_pos_K"][:T]                              # (T, Dp)
    posv = packed["abs_pos_V"][:T]

    # Batch tile: target ~2K rows/step (amortizes ~0.35us/step overhead), keep
    # >=2 grid steps for both v7x TensorCores, and pad B up to a multiple of
    # the tile instead of shrinking it.
    target_rows = 2048
    bb = max(1, min(B, target_rows // max(T, 1)))
    if B >= 2:
        bb = min(bb, -(-B // 2))                   # ceil(B/2) -> grid >= 2
    Bpad = -(-B // bb) * bb
    if Bpad != B:
        padw = ((0, Bpad - B), (0, 0), (0, 0))
        seqs = jnp.pad(seqs, padw)
        pos_embs = jnp.pad(pos_embs, padw)
        neg_embs = jnp.pad(neg_embs, padw)
    grid_len = Bpad // bb
    R = bb * T

    # VMEM budget: streamed tiles double-buffered + resident weight stacks.
    w_bytes = packed["w_stack"].dtype.itemsize
    step_bytes = 2 * (3 * bb * T * Dp * 4 + 2 * T * Dp * 4)
    inv_bytes = 2 * (num_blocks * 5 * Dp * Dp * w_bytes
                     + (num_blocks * 9 + 2) * Dp * 4)
    act_bytes = 10 * R * Dp * 4
    vmem_limit = int(min(64 * 2 ** 20,
                         max(32 * 2 ** 20, step_bytes + inv_bytes + act_bytes)))

    def fixed(shape):
        nd = len(shape)
        return pl.BlockSpec(shape, lambda b, _nd=nd: (0,) * _nd)

    kernel = functools.partial(mgsasrec_kernel, num_blocks=num_blocks,
                               num_heads=num_heads, d_real=d_real)

    out = pl.pallas_call(
        kernel,
        out_shape=jax.ShapeDtypeStruct((grid_len, 2, R), jnp.float32),
        grid=(grid_len,),
        in_specs=[
            pl.BlockSpec((bb, T, Dp), lambda b: (b, 0, 0)),    # seqs tile
            fixed((T, Dp)), fixed((T, Dp)),                    # posK, posV
            pl.BlockSpec((bb, T, Dp), lambda b: (b, 0, 0)),    # pos_embs tile
            pl.BlockSpec((bb, T, Dp), lambda b: (b, 0, 0)),    # neg_embs tile
            fixed((num_blocks, 5, Dp, Dp)),                    # stacked weights
            fixed((num_blocks, 9, Dp)),                        # stacked vectors
            fixed((2, Dp)),                                    # final layernorm
        ],
        out_specs=pl.BlockSpec((1, 2, R), lambda b: (b, 0, 0)),
        compiler_params=pltpu.CompilerParams(
            dimension_semantics=("parallel",),
            vmem_limit_bytes=vmem_limit),
    )(seqs, posk, posv, pos_embs, neg_embs,
      packed["w_stack"], packed["vec_stack"], packed["last_ln"])

    # (grid, 2, bb*T) -> (2, Bpad, T) -> strip the batch padding.
    out = jnp.moveaxis(out.reshape(grid_len, 2, bb, T), 1, 0).reshape(2, Bpad, T)
    return out[0, :B], out[1, :B]


# ----------------------------------------------------------------------------
# Parameter construction (torch-like raw params) + head-padded packing.
# ----------------------------------------------------------------------------
def init_params(key, item_num, maxlen, hidden, num_blocks):
    D = hidden
    keys = jax.random.split(key, 3 + num_blocks * 5)
    ki = iter(keys)

    def nrm(k, shape, scale=0.02):
        return (scale * jax.random.normal(k, shape)).astype(jnp.float32)

    item_emb = nrm(next(ki), (item_num + 1, D)).at[0].set(0.0)   # padding_idx=0
    abs_pos_K = nrm(next(ki), (maxlen, D))
    abs_pos_V = nrm(next(ki), (maxlen, D))
    ones = jnp.ones((D,), jnp.float32)
    zeros = jnp.zeros((D,), jnp.float32)

    blocks = []
    for _ in range(num_blocks):
        blocks.append(dict(
            q_w=nrm(next(ki), (D, D)), k_w=nrm(next(ki), (D, D)),
            v_w=nrm(next(ki), (D, D)),
            conv1_w=nrm(next(ki), (D, D)), conv2_w=nrm(next(ki), (D, D)),
            ln1_g=ones, ln1_b=zeros, q_b=zeros, k_b=zeros, v_b=zeros,
            ln2_g=ones, ln2_b=zeros, conv1_b=zeros, conv2_b=zeros))
    return dict(item_emb=item_emb, abs_pos_K=abs_pos_K, abs_pos_V=abs_pos_V,
                blocks=blocks, last_g=ones, last_b=zeros)


def pack_params(raw, num_heads):
    D = raw["item_emb"].shape[1]
    assert D % num_heads == 0
    hs = D // num_heads
    hsp = -(-hs // 128) * 128                 # pad each head to a 128-lane multiple
    pv = functools.partial(_head_pad_last, num_heads=num_heads, hs=hs, hsp=hsp)
    pm = functools.partial(_head_pad_mat, num_heads=num_heads, hs=hs, hsp=hsp)

    w_blocks, vec_blocks = [], []
    for blk in raw["blocks"]:
        # weight order: [Q_w, K_w, V_w, conv1_w, conv2_w]
        w_blocks.append(jnp.stack([pm(blk["q_w"]), pm(blk["k_w"]), pm(blk["v_w"]),
                                   pm(blk["conv1_w"]), pm(blk["conv2_w"])]))
        # vector order: [ln1_g, ln1_b, Q_b, K_b, V_b, ln2_g, ln2_b, c1_b, c2_b]
        vec_blocks.append(jnp.stack([pv(blk["ln1_g"]), pv(blk["ln1_b"]),
                                     pv(blk["q_b"]), pv(blk["k_b"]), pv(blk["v_b"]),
                                     pv(blk["ln2_g"]), pv(blk["ln2_b"]),
                                     pv(blk["conv1_b"]), pv(blk["conv2_b"])]))

    return dict(
        item_emb=pv(raw["item_emb"]),                       # (item_num+1, Dp) f32
        abs_pos_K=pv(raw["abs_pos_K"]),                     # (maxlen, Dp) f32
        abs_pos_V=pv(raw["abs_pos_V"]),
        w_stack=jnp.stack(w_blocks).astype(MXU_DTYPE),      # (nb, 5, Dp, Dp) bf16
        vec_stack=jnp.stack(vec_blocks),                    # (nb, 9, Dp) f32
        last_ln=jnp.stack([pv(raw["last_g"]), pv(raw["last_b"])]))   # (2, Dp)


# ----------------------------------------------------------------------------
if __name__ == "__main__":
    B, T, D = 2, 8, 32          # batch, maxlen, hidden_units
    num_blocks, num_heads = 2, 2
    item_num = 50

    key = jax.random.PRNGKey(0)
    k_params, k_log, k_pos, k_neg = jax.random.split(key, 4)

    raw = init_params(k_params, item_num, T, D, num_blocks)
    packed = pack_params(raw, num_heads)

    log_seqs = jax.random.randint(k_log, (B, T), 1, item_num + 1, dtype=jnp.int32)
    pos_seqs = jax.random.randint(k_pos, (B, T), 1, item_num + 1, dtype=jnp.int32)
    neg_seqs = jax.random.randint(k_neg, (B, T), 1, item_num + 1, dtype=jnp.int32)

    fwd = jax.jit(functools.partial(mgsasrec_forward,
                                    num_heads=num_heads, d_real=D))
    pos_logits, neg_logits = fwd(packed, log_seqs, pos_seqs, neg_seqs)
    jax.block_until_ready((pos_logits, neg_logits))

    assert pos_logits.shape == (B, T) and neg_logits.shape == (B, T)
    assert bool(jnp.all(jnp.isfinite(pos_logits)))
    assert bool(jnp.all(jnp.isfinite(neg_logits)))
    print("KERNEL_OK")
</pallas_src>

<mosaic_0001>
module attributes {stable_mosaic.version = 11 : i64} {
  func.func @mgsasrec_kernel(%arg0: i32, %arg1: memref<1x8x256xf32, #tpu.memory_space<vmem>>, %arg2: memref<8x256xf32, #tpu.memory_space<vmem>>, %arg3: memref<8x256xf32, #tpu.memory_space<vmem>>, %arg4: memref<1x8x256xf32, #tpu.memory_space<vmem>>, %arg5: memref<1x8x256xf32, #tpu.memory_space<vmem>>, %arg6: memref<2x5x256x256xbf16, #tpu.memory_space<vmem>>, %arg7: memref<2x9x256xf32, #tpu.memory_space<vmem>>, %arg8: memref<2x256xf32, #tpu.memory_space<vmem>>, %arg9: memref<1x2x8xf32, #tpu.memory_space<vmem>>) attributes {dimension_semantics = [#tpu.dimension_semantics<parallel>], iteration_bounds = array<i64: 2>, scalar_prefetch = 0 : i64, scratch_operands = 0 : i64, tpu.core_type = #tpu.core_type<tc>, window_params = [{transform_indices = @transform_0, window_bounds = array<i64: 1, 8, 256>}, {pipeline_mode = #tpu.pipeline_mode<synchronous>, transform_indices = @transform_1, window_bounds = array<i64: 8, 256>}, {pipeline_mode = #tpu.pipeline_mode<synchronous>, transform_indices = @transform_2, window_bounds = array<i64: 8, 256>}, {transform_indices = @transform_3, window_bounds = array<i64: 1, 8, 256>}, {transform_indices = @transform_4, window_bounds = array<i64: 1, 8, 256>}, {pipeline_mode = #tpu.pipeline_mode<synchronous>, transform_indices = @transform_5, window_bounds = array<i64: 2, 5, 256, 256>}, {pipeline_mode = #tpu.pipeline_mode<synchronous>, transform_indices = @transform_6, window_bounds = array<i64: 2, 9, 256>}, {pipeline_mode = #tpu.pipeline_mode<synchronous>, transform_indices = @transform_7, window_bounds = array<i64: 2, 256>}, {transform_indices = @transform_8, window_bounds = array<i64: 1, 2, 8>}]} {
    %0 = tpu.iota {dimensions = array<i32: 1>} : vector<1x256xi32>
    %cst = arith.constant 0.000000e+00 : f32
    %1 = vector.broadcast %cst : f32 to vector<1x256xf32>
    %c0_i32 = arith.constant 0 : i32
    %2 = vector.broadcast %c0_i32 : i32 to vector<1x256xi32>
    %3 = arith.cmpi sge, %0, %2 : vector<1x256xi32>
    %c16_i32 = arith.constant 16 : i32
    %4 = vector.broadcast %c16_i32 : i32 to vector<1x256xi32>
    %5 = arith.cmpi slt, %0, %4 : vector<1x256xi32>
    %6 = arith.andi %3, %5 : vector<1x256xi1>
    %cst_0 = arith.constant 1.000000e+00 : f32
    %cst_1 = arith.constant 0.000000e+00 : f32
    %7 = vector.broadcast %cst_0 : f32 to vector<1x256xf32>
    %8 = vector.broadcast %cst_1 : f32 to vector<1x256xf32>
    %9 = arith.select %6, %7, %8 : vector<1x256xi1>, vector<1x256xf32>
    %10 = arith.addf %1, %9 : vector<1x256xf32>
    %c128_i32 = arith.constant 128 : i32
    %11 = vector.broadcast %c128_i32 : i32 to vector<1x256xi32>
    %12 = arith.cmpi sge, %0, %11 : vector<1x256xi32>
    %c144_i32 = arith.constant 144 : i32
    %13 = vector.broadcast %c144_i32 : i32 to vector<1x256xi32>
    %14 = arith.cmpi slt, %0, %13 : vector<1x256xi32>
    %15 = arith.andi %12, %14 : vector<1x256xi1>
    %cst_2 = arith.constant 1.000000e+00 : f32
    %cst_3 = arith.constant 0.000000e+00 : f32
    %16 = vector.broadcast %cst_2 : f32 to vector<1x256xf32>
    %17 = vector.broadcast %cst_3 : f32 to vector<1x256xf32>
    %18 = arith.select %15, %16, %17 : vector<1x256xi1>, vector<1x256xf32>
    %19 = arith.addf %10, %18 : vector<1x256xf32>
    %c0 = arith.constant 0 : index
    %c0_4 = arith.constant 0 : index
    %c0_5 = arith.constant 0 : index
    %20 = vector.load %arg1[%c0, %c0_4, %c0_5] : memref<1x8x256xf32, #tpu.memory_space<vmem>>, vector<1x8x256xf32>
    %21 = vector.shape_cast %20 : vector<1x8x256xf32> to vector<8x256xf32>
    %c0_6 = arith.constant 0 : index
    %c0_7 = arith.constant 0 : index
    %22 = vector.load %arg2[%c0_6, %c0_7] : memref<8x256xf32, #tpu.memory_space<vmem>>, vector<8x256xf32>
    %c0_8 = arith.constant 0 : index
    %c0_9 = arith.constant 0 : index
    %23 = vector.load %arg3[%c0_8, %c0_9] : memref<8x256xf32, #tpu.memory_space<vmem>>, vector<8x256xf32>
    %24 = tpu.iota {dimensions = array<i32: 0>} : vector<8x8xi32>
    %25 = tpu.iota {dimensions = array<i32: 1>} : vector<8x8xi32>
    %26 = arith.cmpi sgt, %25, %24 : vector<8x8xi32>
    %cst_10 = arith.constant -4.2949673E+9 : f32
    %cst_11 = arith.constant 0.000000e+00 : f32
    %27 = vector.broadcast %cst_10 : f32 to vector<8x8xf32>
    %28 = vector.broadcast %cst_11 : f32 to vector<8x8xf32>
    %29 = arith.select %26, %27, %28 : vector<8x8xi1>, vector<8x8xf32>
    %30 = vector.shape_cast %29 : vector<8x8xf32> to vector<1x8x8xf32>
    %c0_12 = arith.constant 0 : index
    %c0_13 = arith.constant 0 : index
    %c0_14 = arith.constant 0 : index
    %31 = vector.load %arg7[%c0_12, %c0_13, %c0_14] : memref<2x9x256xf32, #tpu.memory_space<vmem>>, vector<1x9x256xf32>
    %32 = vector.shape_cast %31 : vector<1x9x256xf32> to vector<9x256xf32>
    %33 = vector.extract_strided_slice %32 {offsets = [0, 0], sizes = [1, 256], strides = [1, 1]} : vector<9x256xf32> to vector<1x256xf32>
    %34 = vector.extract_strided_slice %32 {offsets = [1, 0], sizes = [1, 256], strides = [1, 1]} : vector<9x256xf32> to vector<1x256xf32>
    %35 = vector.extract_strided_slice %32 {offsets = [2, 0], sizes = [1, 256], strides = [1, 1]} : vector<9x256xf32> to vector<1x256xf32>
    %36 = vector.extract_strided_slice %32 {offsets = [3, 0], sizes = [1, 256], strides = [1, 1]} : vector<9x256xf32> to vector<1x256xf32>
    %37 = vector.extract_strided_slice %32 {offsets = [4, 0], sizes = [1, 256], strides = [1, 1]} : vector<9x256xf32> to vector<1x256xf32>
    %38 = vector.extract_strided_slice %32 {offsets = [5, 0], sizes = [1, 256], strides = [1, 1]} : vector<9x256xf32> to vector<1x256xf32>
    %39 = vector.extract_strided_slice %32 {offsets = [6, 0], sizes = [1, 256], strides = [1, 1]} : vector<9x256xf32> to vector<1x256xf32>
    %40 = vector.extract_strided_slice %32 {offsets = [7, 0], sizes = [1, 256], strides = [1, 1]} : vector<9x256xf32> to vector<1x256xf32>
    %41 = vector.extract_strided_slice %32 {offsets = [8, 0], sizes = [1, 256], strides = [1, 1]} : vector<9x256xf32> to vector<1x256xf32>
    %cst_15 = arith.constant dense<0.000000e+00> : vector<8xf32>
    %42 = vector.multi_reduction <add>, %21, %cst_15 [1] : vector<8x256xf32> to vector<8xf32>
    %43 = vector.shape_cast %42 : vector<8xf32> to vector<8x1xf32>
    %cst_16 = arith.constant 3.125000e-02 : f32
    %44 = vector.broadcast %cst_16 : f32 to vector<8x1xf32>
    %45 = arith.mulf %43, %44 : vector<8x1xf32>
    %46 = vector.broadcast %45 : vector<8x1xf32> to vector<8x256xf32>
    %47 = arith.subf %21, %46 : vector<8x256xf32>
    %48 = vector.broadcast %19 : vector<1x256xf32> to vector<8x256xf32>
    %49 = arith.mulf %47, %48 : vector<8x256xf32>
    %50 = arith.mulf %49, %49 : vector<8x256xf32>
    %cst_17 = arith.constant dense<0.000000e+00> : vector<8xf32>
    %51 = vector.multi_reduction <add>, %50, %cst_17 [1] : vector<8x256xf32> to vector<8xf32>
    %52 = vector.shape_cast %51 : vector<8xf32> to vector<8x1xf32>
    %cst_18 = arith.constant 3.125000e-02 : f32
    %53 = vector.broadcast %cst_18 : f32 to vector<8x1xf32>
    %54 = arith.mulf %52, %53 : vector<8x1xf32>
    %cst_19 = arith.constant 9.99999993E-9 : f32
    %55 = vector.broadcast %cst_19 : f32 to vector<8x1xf32>
    %56 = arith.addf %54, %55 : vector<8x1xf32>
    %57 = math.rsqrt %56 : vector<8x1xf32>
    %58 = vector.broadcast %57 : vector<8x1xf32> to vector<8x256xf32>
    %59 = arith.mulf %49, %58 : vector<8x256xf32>
    %60 = vector.broadcast %33 : vector<1x256xf32> to vector<8x256xf32>
    %61 = arith.mulf %59, %60 : vector<8x256xf32>
    %62 = vector.broadcast %34 : vector<1x256xf32> to vector<8x256xf32>
    %63 = arith.addf %61, %62 : vector<8x256xf32>
    %c0_20 = arith.constant 0 : index
    %c0_21 = arith.constant 0 : index
    %c0_22 = arith.constant 0 : index
    %c0_23 = arith.constant 0 : index
    %64 = vector.load %arg6[%c0_20, %c0_21, %c0_22, %c0_23] : memref<2x5x256x256xbf16, #tpu.memory_space<vmem>>, vector<1x1x256x256xbf16>
    %65 = vector.shape_cast %64 : vector<1x1x256x256xbf16> to vector<256x256xbf16>
    %66 = arith.truncf %63 : vector<8x256xf32> to vector<8x256xbf16>
    %cst_24 = arith.constant dense<0.000000e+00> : vector<8x256xf32>
    %67 = tpu.matmul %66, %65, %cst_24 {dimension_numbers = #tpu.dot_dimension_numbers<[1], [0], [0], [1], [0, 0, 1, 1], [], []>} : vector<8x256xbf16>, vector<256x256xbf16>, vector<8x256xf32> -> vector<8x256xf32>
    %68 = vector.broadcast %35 : vector<1x256xf32> to vector<8x256xf32>
    %69 = arith.addf %67, %68 : vector<8x256xf32>
    %c0_25 = arith.constant 0 : index
    %c1 = arith.constant 1 : index
    %c0_26 = arith.constant 0 : index
    %c0_27 = arith.constant 0 : index
    %70 = vector.load %arg6[%c0_25, %c1, %c0_26, %c0_27] : memref<2x5x256x256xbf16, #tpu.memory_space<vmem>>, vector<1x1x256x256xbf16>
    %71 = vector.shape_cast %70 : vector<1x1x256x256xbf16> to vector<256x256xbf16>
    %72 = arith.truncf %21 : vector<8x256xf32> to vector<8x256xbf16>
    %cst_28 = arith.constant dense<0.000000e+00> : vector<8x256xf32>
    %73 = tpu.matmul %72, %71, %cst_28 {dimension_numbers = #tpu.dot_dimension_numbers<[1], [0], [0], [1], [0, 0, 1, 1], [], []>} : vector<8x256xbf16>, vector<256x256xbf16>, vector<8x256xf32> -> vector<8x256xf32>
    %74 = vector.broadcast %36 : vector<1x256xf32> to vector<8x256xf32>
    %75 = arith.addf %73, %74 : vector<8x256xf32>
    %c0_29 = arith.constant 0 : index
    %c2 = arith.constant 2 : index
    %c0_30 = arith.constant 0 : index
    %c0_31 = arith.constant 0 : index
    %76 = vector.load %arg6[%c0_29, %c2, %c0_30, %c0_31] : memref<2x5x256x256xbf16, #tpu.memory_space<vmem>>, vector<1x1x256x256xbf16>
    %77 = vector.shape_cast %76 : vector<1x1x256x256xbf16> to vector<256x256xbf16>
    %78 = arith.truncf %21 : vector<8x256xf32> to vector<8x256xbf16>
    %cst_32 = arith.constant dense<0.000000e+00> : vector<8x256xf32>
    %79 = tpu.matmul %78, %77, %cst_32 {dimension_numbers = #tpu.dot_dimension_numbers<[1], [0], [0], [1], [0, 0, 1, 1], [], []>} : vector<8x256xbf16>, vector<256x256xbf16>, vector<8x256xf32> -> vector<8x256xf32>
    %80 = vector.broadcast %37 : vector<1x256xf32> to vector<8x256xf32>
    %81 = arith.addf %79, %80 : vector<8x256xf32>
    %82 = vector.shape_cast %69 : vector<8x256xf32> to vector<1x8x256xf32>
    %83 = arith.truncf %82 : vector<1x8x256xf32> to vector<1x8x256xbf16>
    %84 = vector.shape_cast %75 : vector<8x256xf32> to vector<1x8x256xf32>
    %85 = vector.shape_cast %22 : vector<8x256xf32> to vector<1x8x256xf32>
    %86 = arith.addf %84, %85 : vector<1x8x256xf32>
    %87 = arith.truncf %86 : vector<1x8x256xf32> to vector<1x8x256xbf16>
    %88 = vector.shape_cast %81 : vector<8x256xf32> to vector<1x8x256xf32>
    %89 = vector.shape_cast %23 : vector<8x256xf32> to vector<1x8x256xf32>
    %90 = arith.addf %88, %89 : vector<1x8x256xf32>
    %91 = arith.truncf %90 : vector<1x8x256xf32> to vector<1x8x256xbf16>
    %92 = vector.extract_strided_slice %83 {offsets = [0, 0, 0], sizes = [1, 8, 128], strides = [1, 1, 1]} : vector<1x8x256xbf16> to vector<1x8x128xbf16>
    %93 = vector.extract_strided_slice %87 {offsets = [0, 0, 0], sizes = [1, 8, 128], strides = [1, 1, 1]} : vector<1x8x256xbf16> to vector<1x8x128xbf16>
    "tpu.trace_start"() <{level = 10 : i32, message = "bqd,bkd->bqk"}> : () -> ()
    %cst_33 = arith.constant dense<0.000000e+00> : vector<1x8x8xf32>
    %94 = tpu.matmul %92, %93, %cst_33 {dimension_numbers = #tpu.dot_dimension_numbers<[2], [2], [1], [1], [0, 0, 0, 1, 1, 1], [0], [0]>} : vector<1x8x128xbf16>, vector<1x8x128xbf16>, vector<1x8x8xf32> -> vector<1x8x8xf32>
    "tpu.trace_stop"() : () -> ()
    %cst_34 = arith.constant 2.500000e-01 : f32
    %95 = vector.broadcast %cst_34 : f32 to vector<1x8x8xf32>
    %96 = arith.mulf %94, %95 : vector<1x8x8xf32>
    %97 = arith.addf %96, %30 : vector<1x8x8xf32>
    %cst_35 = arith.constant dense<0xFF800000> : vector<1x8xf32>
    %98 = vector.multi_reduction <maximumf>, %97, %cst_35 [2] : vector<1x8x8xf32> to vector<1x8xf32>
    %99 = vector.shape_cast %98 : vector<1x8xf32> to vector<1x8x1xf32>
    %100 = vector.broadcast %99 : vector<1x8x1xf32> to vector<1x8x8xf32>
    %101 = arith.subf %97, %100 : vector<1x8x8xf32>
    %102 = math.exp %101 : vector<1x8x8xf32>
    %cst_36 = arith.constant dense<0.000000e+00> : vector<1x8xf32>
    %103 = vector.multi_reduction <add>, %102, %cst_36 [2] : vector<1x8x8xf32> to vector<1x8xf32>
    %104 = vector.shape_cast %103 : vector<1x8xf32> to vector<1x8x1xf32>
    %105 = vector.broadcast %104 : vector<1x8x1xf32> to vector<1x8x8xf32>
    %106 = arith.divf %102, %105 : vector<1x8x8xf32>
    %107 = arith.truncf %106 : vector<1x8x8xf32> to vector<1x8x8xbf16>
    %108 = vector.extract_strided_slice %91 {offsets = [0, 0, 0], sizes = [1, 8, 128], strides = [1, 1, 1]} : vector<1x8x256xbf16> to vector<1x8x128xbf16>
    "tpu.trace_start"() <{level = 10 : i32, message = "bqk,bkd->bqd"}> : () -> ()
    %cst_37 = arith.constant dense<0.000000e+00> : vector<1x8x128xf32>
    %109 = tpu.matmul %107, %108, %cst_37 {dimension_numbers = #tpu.dot_dimension_numbers<[2], [1], [1], [2], [0, 0, 0, 1, 1, 2], [0], [0]>} : vector<1x8x8xbf16>, vector<1x8x128xbf16>, vector<1x8x128xf32> -> vector<1x8x128xf32>
    "tpu.trace_stop"() : () -> ()
    %110 = vector.extract_strided_slice %83 {offsets = [0, 0, 128], sizes = [1, 8, 128], strides = [1, 1, 1]} : vector<1x8x256xbf16> to vector<1x8x128xbf16>
    %111 = vector.extract_strided_slice %87 {offsets = [0, 0, 128], sizes = [1, 8, 128], strides = [1, 1, 1]} : vector<1x8x256xbf16> to vector<1x8x128xbf16>
    "tpu.trace_start"() <{level = 10 : i32, message = "bqd,bkd->bqk"}> : () -> ()
    %cst_38 = arith.constant dense<0.000000e+00> : vector<1x8x8xf32>
    %112 = tpu.matmul %110, %111, %cst_38 {dimension_numbers = #tpu.dot_dimension_numbers<[2], [2], [1], [1], [0, 0, 0, 1, 1, 1], [0], [0]>} : vector<1x8x128xbf16>, vector<1x8x128xbf16>, vector<1x8x8xf32> -> vector<1x8x8xf32>
    "tpu.trace_stop"() : () -> ()
    %cst_39 = arith.constant 2.500000e-01 : f32
    %113 = vector.broadcast %cst_39 : f32 to vector<1x8x8xf32>
    %114 = arith.mulf %112, %113 : vector<1x8x8xf32>
    %115 = arith.addf %114, %30 : vector<1x8x8xf32>
    %cst_40 = arith.constant dense<0xFF800000> : vector<1x8xf32>
    %116 = vector.multi_reduction <maximumf>, %115, %cst_40 [2] : vector<1x8x8xf32> to vector<1x8xf32>
    %117 = vector.shape_cast %116 : vector<1x8xf32> to vector<1x8x1xf32>
    %118 = vector.broadcast %117 : vector<1x8x1xf32> to vector<1x8x8xf32>
    %119 = arith.subf %115, %118 : vector<1x8x8xf32>
    %120 = math.exp %119 : vector<1x8x8xf32>
    %cst_41 = arith.constant dense<0.000000e+00> : vector<1x8xf32>
    %121 = vector.multi_reduction <add>, %120, %cst_41 [2] : vector<1x8x8xf32> to vector<1x8xf32>
    %122 = vector.shape_cast %121 : vector<1x8xf32> to vector<1x8x1xf32>
    %123 = vector.broadcast %122 : vector<1x8x1xf32> to vector<1x8x8xf32>
    %124 = arith.divf %120, %123 : vector<1x8x8xf32>
    %125 = arith.truncf %124 : vector<1x8x8xf32> to vector<1x8x8xbf16>
    %126 = vector.extract_strided_slice %91 {offsets = [0, 0, 128], sizes = [1, 8, 128], strides = [1, 1, 1]} : vector<1x8x256xbf16> to vector<1x8x128xbf16>
    "tpu.trace_start"() <{level = 10 : i32, message = "bqk,bkd->bqd"}> : () -> ()
    %cst_42 = arith.constant dense<0.000000e+00> : vector<1x8x128xf32>
    %127 = tpu.matmul %125, %126, %cst_42 {dimension_numbers = #tpu.dot_dimension_numbers<[2], [1], [1], [2], [0, 0, 0, 1, 1, 2], [0], [0]>} : vector<1x8x8xbf16>, vector<1x8x128xbf16>, vector<1x8x128xf32> -> vector<1x8x128xf32>
    "tpu.trace_stop"() : () -> ()
    %128 = tpu.concatenate %109, %127 in 2 : vector<1x8x128xf32>, vector<1x8x128xf32> -> vector<1x8x256xf32>
    %129 = vector.shape_cast %128 : vector<1x8x256xf32> to vector<8x256xf32>
    %130 = arith.addf %63, %129 : vector<8x256xf32>
    %cst_43 = arith.constant dense<0.000000e+00> : vector<8xf32>
    %131 = vector.multi_reduction <add>, %130, %cst_43 [1] : vector<8x256xf32> to vector<8xf32>
    %132 = vector.shape_cast %131 : vector<8xf32> to vector<8x1xf32>
    %cst_44 = arith.constant 3.125000e-02 : f32
    %133 = vector.broadcast %cst_44 : f32 to vector<8x1xf32>
    %134 = arith.mulf %132, %133 : vector<8x1xf32>
    %135 = vector.broadcast %134 : vector<8x1xf32> to vector<8x256xf32>
    %136 = arith.subf %130, %135 : vector<8x256xf32>
    %137 = vector.broadcast %19 : vector<1x256xf32> to vector<8x256xf32>
    %138 = arith.mulf %136, %137 : vector<8x256xf32>
    %139 = arith.mulf %138, %138 : vector<8x256xf32>
    %cst_45 = arith.constant dense<0.000000e+00> : vector<8xf32>
    %140 = vector.multi_reduction <add>, %139, %cst_45 [1] : vector<8x256xf32> to vector<8xf32>
    %141 = vector.shape_cast %140 : vector<8xf32> to vector<8x1xf32>
    %cst_46 = arith.constant 3.125000e-02 : f32
    %142 = vector.broadcast %cst_46 : f32 to vector<8x1xf32>
    %143 = arith.mulf %141, %142 : vector<8x1xf32>
    %cst_47 = arith.constant 9.99999993E-9 : f32
    %144 = vector.broadcast %cst_47 : f32 to vector<8x1xf32>
    %145 = arith.addf %143, %144 : vector<8x1xf32>
    %146 = math.rsqrt %145 : vector<8x1xf32>
    %147 = vector.broadcast %146 : vector<8x1xf32> to vector<8x256xf32>
    %148 = arith.mulf %138, %147 : vector<8x256xf32>
    %149 = vector.broadcast %38 : vector<1x256xf32> to vector<8x256xf32>
    %150 = arith.mulf %148, %149 : vector<8x256xf32>
    %151 = vector.broadcast %39 : vector<1x256xf32> to vector<8x256xf32>
    %152 = arith.addf %150, %151 : vector<8x256xf32>
    %c0_48 = arith.constant 0 : index
    %c3 = arith.constant 3 : index
    %c0_49 = arith.constant 0 : index
    %c0_50 = arith.constant 0 : index
    %153 = vector.load %arg6[%c0_48, %c3, %c0_49, %c0_50] : memref<2x5x256x256xbf16, #tpu.memory_space<vmem>>, vector<1x1x256x256xbf16>
    %154 = vector.shape_cast %153 : vector<1x1x256x256xbf16> to vector<256x256xbf16>
    %155 = arith.truncf %152 : vector<8x256xf32> to vector<8x256xbf16>
    %cst_51 = arith.constant dense<0.000000e+00> : vector<8x256xf32>
    %156 = tpu.matmul %155, %154, %cst_51 {dimension_numbers = #tpu.dot_dimension_numbers<[1], [0], [0], [1], [0, 0, 1, 1], [], []>} : vector<8x256xbf16>, vector<256x256xbf16>, vector<8x256xf32> -> vector<8x256xf32>
    %157 = vector.broadcast %40 : vector<1x256xf32> to vector<8x256xf32>
    %158 = arith.addf %156, %157 : vector<8x256xf32>
    %cst_52 = arith.constant 0.000000e+00 : f32
    %159 = vector.broadcast %cst_52 : f32 to vector<8x256xf32>
    %160 = arith.maximumf %158, %159 : vector<8x256xf32>
    %c0_53 = arith.constant 0 : index
    %c4 = arith.constant 4 : index
    %c0_54 = arith.constant 0 : index
    %c0_55 = arith.constant 0 : index
    %161 = vector.load %arg6[%c0_53, %c4, %c0_54, %c0_55] : memref<2x5x256x256xbf16, #tpu.memory_space<vmem>>, vector<1x1x256x256xbf16>
    %162 = vector.shape_cast %161 : vector<1x1x256x256xbf16> to vector<256x256xbf16>
    %163 = arith.truncf %160 : vector<8x256xf32> to vector<8x256xbf16>
    %cst_56 = arith.constant dense<0.000000e+00> : vector<8x256xf32>
    %164 = tpu.matmul %163, %162, %cst_56 {dimension_numbers = #tpu.dot_dimension_numbers<[1], [0], [0], [1], [0, 0, 1, 1], [], []>} : vector<8x256xbf16>, vector<256x256xbf16>, vector<8x256xf32> -> vector<8x256xf32>
    %165 = vector.broadcast %41 : vector<1x256xf32> to vector<8x256xf32>
    %166 = arith.addf %164, %165 : vector<8x256xf32>
    %167 = arith.addf %166, %152 : vector<8x256xf32>
    %c1_57 = arith.constant 1 : index
    %c0_58 = arith.constant 0 : index
    %c0_59 = arith.constant 0 : index
    %168 = vector.load %arg7[%c1_57, %c0_58, %c0_59] : memref<2x9x256xf32, #tpu.memory_space<vmem>>, vector<1x9x256xf32>
    %169 = vector.shape_cast %168 : vector<1x9x256xf32> to vector<9x256xf32>
    %170 = vector.extract_strided_slice %169 {offsets = [0, 0], sizes = [1, 256], strides = [1, 1]} : vector<9x256xf32> to vector<1x256xf32>
    %171 = vector.extract_strided_slice %169 {offsets = [1, 0], sizes = [1, 256], strides = [1, 1]} : vector<9x256xf32> to vector<1x256xf32>
    %172 = vector.extract_strided_slice %169 {offsets = [2, 0], sizes = [1, 256], strides = [1, 1]} : vector<9x256xf32> to vector<1x256xf32>
    %173 = vector.extract_strided_slice %169 {offsets = [3, 0], sizes = [1, 256], strides = [1, 1]} : vector<9x256xf32> to vector<1x256xf32>
    %174 = vector.extract_strided_slice %169 {offsets = [4, 0], sizes = [1, 256], strides = [1, 1]} : vector<9x256xf32> to vector<1x256xf32>
    %175 = vector.extract_strided_slice %169 {offsets = [5, 0], sizes = [1, 256], strides = [1, 1]} : vector<9x256xf32> to vector<1x256xf32>
    %176 = vector.extract_strided_slice %169 {offsets = [6, 0], sizes = [1, 256], strides = [1, 1]} : vector<9x256xf32> to vector<1x256xf32>
    %177 = vector.extract_strided_slice %169 {offsets = [7, 0], sizes = [1, 256], strides = [1, 1]} : vector<9x256xf32> to vector<1x256xf32>
    %178 = vector.extract_strided_slice %169 {offsets = [8, 0], sizes = [1, 256], strides = [1, 1]} : vector<9x256xf32> to vector<1x256xf32>
    %cst_60 = arith.constant dense<0.000000e+00> : vector<8xf32>
    %179 = vector.multi_reduction <add>, %167, %cst_60 [1] : vector<8x256xf32> to vector<8xf32>
    %180 = vector.shape_cast %179 : vector<8xf32> to vector<8x1xf32>
    %cst_61 = arith.constant 3.125000e-02 : f32
    %181 = vector.broadcast %cst_61 : f32 to vector<8x1xf32>
    %182 = arith.mulf %180, %181 : vector<8x1xf32>
    %183 = vector.broadcast %182 : vector<8x1xf32> to vector<8x256xf32>
    %184 = arith.subf %167, %183 : vector<8x256xf32>
    %185 = vector.broadcast %19 : vector<1x256xf32> to vector<8x256xf32>
    %186 = arith.mulf %184, %185 : vector<8x256xf32>
    %187 = arith.mulf %186, %186 : vector<8x256xf32>
    %cst_62 = arith.constant dense<0.000000e+00> : vector<8xf32>
    %188 = vector.multi_reduction <add>, %187, %cst_62 [1] : vector<8x256xf32> to vector<8xf32>
    %189 = vector.shape_cast %188 : vector<8xf32> to vector<8x1xf32>
    %cst_63 = arith.constant 3.125000e-02 : f32
    %190 = vector.broadcast %cst_63 : f32 to vector<8x1xf32>
    %191 = arith.mulf %189, %190 : vector<8x1xf32>
    %cst_64 = arith.constant 9.99999993E-9 : f32
    %192 = vector.broadcast %cst_64 : f32 to vector<8x1xf32>
    %193 = arith.addf %191, %192 : vector<8x1xf32>
    %194 = math.rsqrt %193 : vector<8x1xf32>
    %195 = vector.broadcast %194 : vector<8x1xf32> to vector<8x256xf32>
    %196 = arith.mulf %186, %195 : vector<8x256xf32>
    %197 = vector.broadcast %170 : vector<1x256xf32> to vector<8x256xf32>
    %198 = arith.mulf %196, %197 : vector<8x256xf32>
    %199 = vector.broadcast %171 : vector<1x256xf32> to vector<8x256xf32>
    %200 = arith.addf %198, %199 : vector<8x256xf32>
    %c1_65 = arith.constant 1 : index
    %c0_66 = arith.constant 0 : index
    %c0_67 = arith.constant 0 : index
    %c0_68 = arith.constant 0 : index
    %201 = vector.load %arg6[%c1_65, %c0_66, %c0_67, %c0_68] : memref<2x5x256x256xbf16, #tpu.memory_space<vmem>>, vector<1x1x256x256xbf16>
    %202 = vector.shape_cast %201 : vector<1x1x256x256xbf16> to vector<256x256xbf16>
    %203 = arith.truncf %200 : vector<8x256xf32> to vector<8x256xbf16>
    %cst_69 = arith.constant dense<0.000000e+00> : vector<8x256xf32>
    %204 = tpu.matmul %203, %202, %cst_69 {dimension_numbers = #tpu.dot_dimension_numbers<[1], [0], [0], [1], [0, 0, 1, 1], [], []>} : vector<8x256xbf16>, vector<256x256xbf16>, vector<8x256xf32> -> vector<8x256xf32>
    %205 = vector.broadcast %172 : vector<1x256xf32> to vector<8x256xf32>
    %206 = arith.addf %204, %205 : vector<8x256xf32>
    %c1_70 = arith.constant 1 : index
    %c1_71 = arith.constant 1 : index
    %c0_72 = arith.constant 0 : index
    %c0_73 = arith.constant 0 : index
    %207 = vector.load %arg6[%c1_70, %c1_71, %c0_72, %c0_73] : memref<2x5x256x256xbf16, #tpu.memory_space<vmem>>, vector<1x1x256x256xbf16>
    %208 = vector.shape_cast %207 : vector<1x1x256x256xbf16> to vector<256x256xbf16>
    %209 = arith.truncf %167 : vector<8x256xf32> to vector<8x256xbf16>
    %cst_74 = arith.constant dense<0.000000e+00> : vector<8x256xf32>
    %210 = tpu.matmul %209, %208, %cst_74 {dimension_numbers = #tpu.dot_dimension_numbers<[1], [0], [0], [1], [0, 0, 1, 1], [], []>} : vector<8x256xbf16>, vector<256x256xbf16>, vector<8x256xf32> -> vector<8x256xf32>
    %211 = vector.broadcast %173 : vector<1x256xf32> to vector<8x256xf32>
    %212 = arith.addf %210, %211 : vector<8x256xf32>
    %c1_75 = arith.constant 1 : index
    %c2_76 = arith.constant 2 : index
    %c0_77 = arith.constant 0 : index
    %c0_78 = arith.constant 0 : index
    %213 = vector.load %arg6[%c1_75, %c2_76, %c0_77, %c0_78] : memref<2x5x256x256xbf16, #tpu.memory_space<vmem>>, vector<1x1x256x256xbf16>
    %214 = vector.shape_cast %213 : vector<1x1x256x256xbf16> to vector<256x256xbf16>
    %215 = arith.truncf %167 : vector<8x256xf32> to vector<8x256xbf16>
    %cst_79 = arith.constant dense<0.000000e+00> : vector<8x256xf32>
    %216 = tpu.matmul %215, %214, %cst_79 {dimension_numbers = #tpu.dot_dimension_numbers<[1], [0], [0], [1], [0, 0, 1, 1], [], []>} : vector<8x256xbf16>, vector<256x256xbf16>, vector<8x256xf32> -> vector<8x256xf32>
    %217 = vector.broadcast %174 : vector<1x256xf32> to vector<8x256xf32>
    %218 = arith.addf %216, %217 : vector<8x256xf32>
    %219 = vector.shape_cast %206 : vector<8x256xf32> to vector<1x8x256xf32>
    %220 = arith.truncf %219 : vector<1x8x256xf32> to vector<1x8x256xbf16>
    %221 = vector.shape_cast %212 : vector<8x256xf32> to vector<1x8x256xf32>
    %222 = vector.shape_cast %22 : vector<8x256xf32> to vector<1x8x256xf32>
    %223 = arith.addf %221, %222 : vector<1x8x256xf32>
    %224 = arith.truncf %223 : vector<1x8x256xf32> to vector<1x8x256xbf16>
    %225 = vector.shape_cast %218 : vector<8x256xf32> to vector<1x8x256xf32>
    %226 = vector.shape_cast %23 : vector<8x256xf32> to vector<1x8x256xf32>
    %227 = arith.addf %225, %226 : vector<1x8x256xf32>
    %228 = arith.truncf %227 : vector<1x8x256xf32> to vector<1x8x256xbf16>
    %229 = vector.extract_strided_slice %220 {offsets = [0, 0, 0], sizes = [1, 8, 128], strides = [1, 1, 1]} : vector<1x8x256xbf16> to vector<1x8x128xbf16>
    %230 = vector.extract_strided_slice %224 {offsets = [0, 0, 0], sizes = [1, 8, 128], strides = [1, 1, 1]} : vector<1x8x256xbf16> to vector<1x8x128xbf16>
    "tpu.trace_start"() <{level = 10 : i32, message = "bqd,bkd->bqk"}> : () -> ()
    %cst_80 = arith.constant dense<0.000000e+00> : vector<1x8x8xf32>
    %231 = tpu.matmul %229, %230, %cst_80 {dimension_numbers = #tpu.dot_dimension_numbers<[2], [2], [1], [1], [0, 0, 0, 1, 1, 1], [0], [0]>} : vector<1x8x128xbf16>, vector<1x8x128xbf16>, vector<1x8x8xf32> -> vector<1x8x8xf32>
    "tpu.trace_stop"() : () -> ()
    %cst_81 = arith.constant 2.500000e-01 : f32
    %232 = vector.broadcast %cst_81 : f32 to vector<1x8x8xf32>
    %233 = arith.mulf %231, %232 : vector<1x8x8xf32>
    %234 = arith.addf %233, %30 : vector<1x8x8xf32>
    %cst_82 = arith.constant dense<0xFF800000> : vector<1x8xf32>
    %235 = vector.multi_reduction <maximumf>, %234, %cst_82 [2] : vector<1x8x8xf32> to vector<1x8xf32>
    %236 = vector.shape_cast %235 : vector<1x8xf32> to vector<1x8x1xf32>
    %237 = vector.broadcast %236 : vector<1x8x1xf32> to vector<1x8x8xf32>
    %238 = arith.subf %234, %237 : vector<1x8x8xf32>
    %239 = math.exp %238 : vector<1x8x8xf32>
    %cst_83 = arith.constant dense<0.000000e+00> : vector<1x8xf32>
    %240 = vector.multi_reduction <add>, %239, %cst_83 [2] : vector<1x8x8xf32> to vector<1x8xf32>
    %241 = vector.shape_cast %240 : vector<1x8xf32> to vector<1x8x1xf32>
    %242 = vector.broadcast %241 : vector<1x8x1xf32> to vector<1x8x8xf32>
    %243 = arith.divf %239, %242 : vector<1x8x8xf32>
    %244 = arith.truncf %243 : vector<1x8x8xf32> to vector<1x8x8xbf16>
    %245 = vector.extract_strided_slice %228 {offsets = [0, 0, 0], sizes = [1, 8, 128], strides = [1, 1, 1]} : vector<1x8x256xbf16> to vector<1x8x128xbf16>
    "tpu.trace_start"() <{level = 10 : i32, message = "bqk,bkd->bqd"}> : () -> ()
    %cst_84 = arith.constant dense<0.000000e+00> : vector<1x8x128xf32>
    %246 = tpu.matmul %244, %245, %cst_84 {dimension_numbers = #tpu.dot_dimension_numbers<[2], [1], [1], [2], [0, 0, 0, 1, 1, 2], [0], [0]>} : vector<1x8x8xbf16>, vector<1x8x128xbf16>, vector<1x8x128xf32> -> vector<1x8x128xf32>
    "tpu.trace_stop"() : () -> ()
    %247 = vector.extract_strided_slice %220 {offsets = [0, 0, 128], sizes = [1, 8, 128], strides = [1, 1, 1]} : vector<1x8x256xbf16> to vector<1x8x128xbf16>
    %248 = vector.extract_strided_slice %224 {offsets = [0, 0, 128], sizes = [1, 8, 128], strides = [1, 1, 1]} : vector<1x8x256xbf16> to vector<1x8x128xbf16>
    "tpu.trace_start"() <{level = 10 : i32, message = "bqd,bkd->bqk"}> : () -> ()
    %cst_85 = arith.constant dense<0.000000e+00> : vector<1x8x8xf32>
    %249 = tpu.matmul %247, %248, %cst_85 {dimension_numbers = #tpu.dot_dimension_numbers<[2], [2], [1], [1], [0, 0, 0, 1, 1, 1], [0], [0]>} : vector<1x8x128xbf16>, vector<1x8x128xbf16>, vector<1x8x8xf32> -> vector<1x8x8xf32>
    "tpu.trace_stop"() : () -> ()
    %cst_86 = arith.constant 2.500000e-01 : f32
    %250 = vector.broadcast %cst_86 : f32 to vector<1x8x8xf32>
    %251 = arith.mulf %249, %250 : vector<1x8x8xf32>
    %252 = arith.addf %251, %30 : vector<1x8x8xf32>
    %cst_87 = arith.constant dense<0xFF800000> : vector<1x8xf32>
    %253 = vector.multi_reduction <maximumf>, %252, %cst_87 [2] : vector<1x8x8xf32> to vector<1x8xf32>
    %254 = vector.shape_cast %253 : vector<1x8xf32> to vector<1x8x1xf32>
    %255 = vector.broadcast %254 : vector<1x8x1xf32> to vector<1x8x8xf32>
    %256 = arith.subf %252, %255 : vector<1x8x8xf32>
    %257 = math.exp %256 : vector<1x8x8xf32>
    %cst_88 = arith.constant dense<0.000000e+00> : vector<1x8xf32>
    %258 = vector.multi_reduction <add>, %257, %cst_88 [2] : vector<1x8x8xf32> to vector<1x8xf32>
    %259 = vector.shape_cast %258 : vector<1x8xf32> to vector<1x8x1xf32>
    %260 = vector.broadcast %259 : vector<1x8x1xf32> to vector<1x8x8xf32>
    %261 = arith.divf %257, %260 : vector<1x8x8xf32>
    %262 = arith.truncf %261 : vector<1x8x8xf32> to vector<1x8x8xbf16>
    %263 = vector.extract_strided_slice %228 {offsets = [0, 0, 128], sizes = [1, 8, 128], strides = [1, 1, 1]} : vector<1x8x256xbf16> to vector<1x8x128xbf16>
    "tpu.trace_start"() <{level = 10 : i32, message = "bqk,bkd->bqd"}> : () -> ()
    %cst_89 = arith.constant dense<0.000000e+00> : vector<1x8x128xf32>
    %264 = tpu.matmul %262, %263, %cst_89 {dimension_numbers = #tpu.dot_dimension_numbers<[2], [1], [1], [2], [0, 0, 0, 1, 1, 2], [0], [0]>} : vector<1x8x8xbf16>, vector<1x8x128xbf16>, vector<1x8x128xf32> -> vector<1x8x128xf32>
    "tpu.trace_stop"() : () -> ()
    %265 = tpu.concatenate %246, %264 in 2 : vector<1x8x128xf32>, vector<1x8x128xf32> -> vector<1x8x256xf32>
    %266 = vector.shape_cast %265 : vector<1x8x256xf32> to vector<8x256xf32>
    %267 = arith.addf %200, %266 : vector<8x256xf32>
    %cst_90 = arith.constant dense<0.000000e+00> : vector<8xf32>
    %268 = vector.multi_reduction <add>, %267, %cst_90 [1] : vector<8x256xf32> to vector<8xf32>
    %269 = vector.shape_cast %268 : vector<8xf32> to vector<8x1xf32>
    %cst_91 = arith.constant 3.125000e-02 : f32
    %270 = vector.broadcast %cst_91 : f32 to vector<8x1xf32>
    %271 = arith.mulf %269, %270 : vector<8x1xf32>
    %272 = vector.broadcast %271 : vector<8x1xf32> to vector<8x256xf32>
    %273 = arith.subf %267, %272 : vector<8x256xf32>
    %274 = vector.broadcast %19 : vector<1x256xf32> to vector<8x256xf32>
    %275 = arith.mulf %273, %274 : vector<8x256xf32>
    %276 = arith.mulf %275, %275 : vector<8x256xf32>
    %cst_92 = arith.constant dense<0.000000e+00> : vector<8xf32>
    %277 = vector.multi_reduction <add>, %276, %cst_92 [1] : vector<8x256xf32> to vector<8xf32>
    %278 = vector.shape_cast %277 : vector<8xf32> to vector<8x1xf32>
    %cst_93 = arith.constant 3.125000e-02 : f32
    %279 = vector.broadcast %cst_93 : f32 to vector<8x1xf32>
    %280 = arith.mulf %278, %279 : vector<8x1xf32>
    %cst_94 = arith.constant 9.99999993E-9 : f32
    %281 = vector.broadcast %cst_94 : f32 to vector<8x1xf32>
    %282 = arith.addf %280, %281 : vector<8x1xf32>
    %283 = math.rsqrt %282 : vector<8x1xf32>
    %284 = vector.broadcast %283 : vector<8x1xf32> to vector<8x256xf32>
    %285 = arith.mulf %275, %284 : vector<8x256xf32>
    %286 = vector.broadcast %175 : vector<1x256xf32> to vector<8x256xf32>
    %287 = arith.mulf %285, %286 : vector<8x256xf32>
    %288 = vector.broadcast %176 : vector<1x256xf32> to vector<8x256xf32>
    %289 = arith.addf %287, %288 : vector<8x256xf32>
    %c1_95 = arith.constant 1 : index
    %c3_96 = arith.constant 3 : index
    %c0_97 = arith.constant 0 : index
    %c0_98 = arith.constant 0 : index
    %290 = vector.load %arg6[%c1_95, %c3_96, %c0_97, %c0_98] : memref<2x5x256x256xbf16, #tpu.memory_space<vmem>>, vector<1x1x256x256xbf16>
    %291 = vector.shape_cast %290 : vector<1x1x256x256xbf16> to vector<256x256xbf16>
    %292 = arith.truncf %289 : vector<8x256xf32> to vector<8x256xbf16>
    %cst_99 = arith.constant dense<0.000000e+00> : vector<8x256xf32>
    %293 = tpu.matmul %292, %291, %cst_99 {dimension_numbers = #tpu.dot_dimension_numbers<[1], [0], [0], [1], [0, 0, 1, 1], [], []>} : vector<8x256xbf16>, vector<256x256xbf16>, vector<8x256xf32> -> vector<8x256xf32>
    %294 = vector.broadcast %177 : vector<1x256xf32> to vector<8x256xf32>
    %295 = arith.addf %293, %294 : vector<8x256xf32>
    %cst_100 = arith.constant 0.000000e+00 : f32
    %296 = vector.broadcast %cst_100 : f32 to vector<8x256xf32>
    %297 = arith.maximumf %295, %296 : vector<8x256xf32>
    %c1_101 = arith.constant 1 : index
    %c4_102 = arith.constant 4 : index
    %c0_103 = arith.constant 0 : index
    %c0_104 = arith.constant 0 : index
    %298 = vector.load %arg6[%c1_101, %c4_102, %c0_103, %c0_104] : memref<2x5x256x256xbf16, #tpu.memory_space<vmem>>, vector<1x1x256x256xbf16>
    %299 = vector.shape_cast %298 : vector<1x1x256x256xbf16> to vector<256x256xbf16>
    %300 = arith.truncf %297 : vector<8x256xf32> to vector<8x256xbf16>
    %cst_105 = arith.constant dense<0.000000e+00> : vector<8x256xf32>
    %301 = tpu.matmul %300, %299, %cst_105 {dimension_numbers = #tpu.dot_dimension_numbers<[1], [0], [0], [1], [0, 0, 1, 1], [], []>} : vector<8x256xbf16>, vector<256x256xbf16>, vector<8x256xf32> -> vector<8x256xf32>
    %302 = vector.broadcast %178 : vector<1x256xf32> to vector<8x256xf32>
    %303 = arith.addf %301, %302 : vector<8x256xf32>
    %304 = arith.addf %303, %289 : vector<8x256xf32>
    %c0_106 = arith.constant 0 : index
    %c0_107 = arith.constant 0 : index
    %305 = vector.load %arg8[%c0_106, %c0_107] : memref<2x256xf32, #tpu.memory_space<vmem>>, vector<2x256xf32>
    %306 = vector.extract_strided_slice %305 {offsets = [0, 0], sizes = [1, 256], strides = [1, 1]} : vector<2x256xf32> to vector<1x256xf32>
    %307 = vector.extract_strided_slice %305 {offsets = [1, 0], sizes = [1, 256], strides = [1, 1]} : vector<2x256xf32> to vector<1x256xf32>
    %cst_108 = arith.constant dense<0.000000e+00> : vector<8xf32>
    %308 = vector.multi_reduction <add>, %304, %cst_108 [1] : vector<8x256xf32> to vector<8xf32>
    %309 = vector.shape_cast %308 : vector<8xf32> to vector<8x1xf32>
    %cst_109 = arith.constant 3.125000e-02 : f32
    %310 = vector.broadcast %cst_109 : f32 to vector<8x1xf32>
    %311 = arith.mulf %309, %310 : vector<8x1xf32>
    %312 = vector.broadcast %311 : vector<8x1xf32> to vector<8x256xf32>
    %313 = arith.subf %304, %312 : vector<8x256xf32>
    %314 = vector.broadcast %19 : vector<1x256xf32> to vector<8x256xf32>
    %315 = arith.mulf %313, %314 : vector<8x256xf32>
    %316 = arith.mulf %315, %315 : vector<8x256xf32>
    %cst_110 = arith.constant dense<0.000000e+00> : vector<8xf32>
    %317 = vector.multi_reduction <add>, %316, %cst_110 [1] : vector<8x256xf32> to vector<8xf32>
    %318 = vector.shape_cast %317 : vector<8xf32> to vector<8x1xf32>
    %cst_111 = arith.constant 3.125000e-02 : f32
    %319 = vector.broadcast %cst_111 : f32 to vector<8x1xf32>
    %320 = arith.mulf %318, %319 : vector<8x1xf32>
    %cst_112 = arith.constant 9.99999993E-9 : f32
    %321 = vector.broadcast %cst_112 : f32 to vector<8x1xf32>
    %322 = arith.addf %320, %321 : vector<8x1xf32>
    %323 = math.rsqrt %322 : vector<8x1xf32>
    %324 = vector.broadcast %323 : vector<8x1xf32> to vector<8x256xf32>
    %325 = arith.mulf %315, %324 : vector<8x256xf32>
    %326 = vector.broadcast %306 : vector<1x256xf32> to vector<8x256xf32>
    %327 = arith.mulf %325, %326 : vector<8x256xf32>
    %328 = vector.broadcast %307 : vector<1x256xf32> to vector<8x256xf32>
    %329 = arith.addf %327, %328 : vector<8x256xf32>
    %c0_113 = arith.constant 0 : index
    %c0_114 = arith.constant 0 : index
    %c0_115 = arith.constant 0 : index
    %330 = vector.load %arg4[%c0_113, %c0_114, %c0_115] : memref<1x8x256xf32, #tpu.memory_space<vmem>>, vector<1x8x256xf32>
    %331 = vector.shape_cast %330 : vector<1x8x256xf32> to vector<8x256xf32>
    %332 = arith.mulf %329, %331 : vector<8x256xf32>
    %cst_116 = arith.constant dense<0.000000e+00> : vector<8xf32>
    %333 = vector.multi_reduction <add>, %332, %cst_116 [1] : vector<8x256xf32> to vector<8xf32>
    %334 = vector.shape_cast %333 : vector<8xf32> to vector<8x1xf32>
    %c0_117 = arith.constant 0 : index
    %c0_118 = arith.constant 0 : index
    %c0_119 = arith.constant 0 : index
    %335 = vector.load %arg5[%c0_117, %c0_118, %c0_119] : memref<1x8x256xf32, #tpu.memory_space<vmem>>, vector<1x8x256xf32>
    %336 = vector.shape_cast %335 : vector<1x8x256xf32> to vector<8x256xf32>
    %337 = arith.mulf %329, %336 : vector<8x256xf32>
    %cst_120 = arith.constant dense<0.000000e+00> : vector<8xf32>
    %338 = vector.multi_reduction <add>, %337, %cst_120 [1] : vector<8x256xf32> to vector<8xf32>
    %339 = vector.shape_cast %338 : vector<8xf32> to vector<8x1xf32>
    %340 = tpu.concatenate %334, %339 in 1 : vector<8x1xf32>, vector<8x1xf32> -> vector<8x2xf32>
    %341 = tpu.transpose %340, [1, 0] : vector<8x2xf32> -> vector<2x8xf32>
    %c0_121 = arith.constant 0 : index
    %c0_122 = arith.constant 0 : index
    %c0_123 = arith.constant 0 : index
    %342 = vector.load %arg9[%c0_121, %c0_122, %c0_123] : memref<1x2x8xf32, #tpu.memory_space<vmem>>, vector<1x2x8xf32>
    %343 = vector.shape_cast %342 : vector<1x2x8xf32> to vector<2x8xf32>
    %344 = vector.shape_cast %341 : vector<2x8xf32> to vector<1x2x8xf32>
    tpu.vector_store %arg9[%c0_121, %c0_122, %c0_123], %344 {strides = array<i32>} : memref<1x2x8xf32, #tpu.memory_space<vmem>>, vector<1x2x8xf32>,
    return
  }
  func.func @transform_0(%arg0: i32) -> (i32, i32, i32) {
    %c0_i32 = arith.constant 0 : i32
    %c0_i32_0 = arith.constant 0 : i32
    %c0_i32_1 = arith.constant 0 : i32
    return %arg0, %c0_i32, %c0_i32_0 : i32, i32, i32
  }
  func.func @transform_1(%arg0: i32) -> (i32, i32) {
    %c0_i32 = arith.constant 0 : i32
    %c0_i32_0 = arith.constant 0 : i32
    %c0_i32_1 = arith.constant 0 : i32
    return %c0_i32, %c0_i32_0 : i32, i32
  }
  func.func @transform_2(%arg0: i32) -> (i32, i32) {
    %c0_i32 = arith.constant 0 : i32
    %c0_i32_0 = arith.constant 0 : i32
    %c0_i32_1 = arith.constant 0 : i32
    return %c0_i32, %c0_i32_0 : i32, i32
  }
  func.func @transform_3(%arg0: i32) -> (i32, i32, i32) {
    %c0_i32 = arith.constant 0 : i32
    %c0_i32_0 = arith.constant 0 : i32
    %c0_i32_1 = arith.constant 0 : i32
    return %arg0, %c0_i32, %c0_i32_0 : i32, i32, i32
  }
  func.func @transform_4(%arg0: i32) -> (i32, i32, i32) {
    %c0_i32 = arith.constant 0 : i32
    %c0_i32_0 = arith.constant 0 : i32
    %c0_i32_1 = arith.constant 0 : i32
    return %arg0, %c0_i32, %c0_i32_0 : i32, i32, i32
  }
  func.func @transform_5(%arg0: i32) -> (i32, i32, i32, i32) {
    %c0_i32 = arith.constant 0 : i32
    %c0_i32_0 = arith.constant 0 : i32
    %c0_i32_1 = arith.constant 0 : i32
    %c0_i32_2 = arith.constant 0 : i32
    %c0_i32_3 = arith.constant 0 : i32
    return %c0_i32, %c0_i32_0, %c0_i32_1, %c0_i32_2 : i32, i32, i32, i32
  }
  func.func @transform_6(%arg0: i32) -> (i32, i32, i32) {
    %c0_i32 = arith.constant 0 : i32
    %c0_i32_0 = arith.constant 0 : i32
    %c0_i32_1 = arith.constant 0 : i32
    %c0_i32_2 = arith.constant 0 : i32
    return %c0_i32, %c0_i32_0, %c0_i32_1 : i32, i32, i32
  }
  func.func @transform_7(%arg0: i32) -> (i32, i32) {
    %c0_i32 = arith.constant 0 : i32
    %c0_i32_0 = arith.constant 0 : i32
    %c0_i32_1 = arith.constant 0 : i32
    return %c0_i32, %c0_i32_0 : i32, i32
  }
  func.func @transform_8(%arg0: i32) -> (i32, i32, i32) {
    %c0_i32 = arith.constant 0 : i32
    %c0_i32_0 = arith.constant 0 : i32
    %c0_i32_1 = arith.constant 0 : i32
    return %arg0, %c0_i32, %c0_i32_0 : i32, i32, i32
  }
}

</mosaic_0001>

<bundles_post_ra>
// kernel: mgsasrec_forward.1
= control target key start
LH: loop header
LB: loop body
LE: loop exit
PB: predicated region body
PF: predicated region fallthrough
CT: control target
= control target key end

     0   :  { %13 = vsyncpa [#allocation3], 0  ;;  %s5308_s0 = inlined_call_operand.vmem [shape: f32[2,8,256], index: 0, kind: input, shape index: {}]   ;;  %s5309_s1 = inlined_call_operand.hbm [shape: f32[8,256], index: 1, kind: input, shape index: {}]   ;;  %s5310_s2 = inlined_call_operand.hbm [shape: f32[8,256], index: 2, kind: input, shape index: {}]   ;;  %s5311_s3 = inlined_call_operand.vmem [shape: f32[2,8,256], index: 3, kind: input, shape index: {}]   ;;  %s5312_s4 = inlined_call_operand.vmem [shape: f32[2,8,256], index: 4, kind: input, shape index: {}]   ;;  %s5313_s5 = inlined_call_operand.hbm [shape: bf16[2,5,256,256], index: 5, kind: input, shape index: {}]   ;;  %s5314_s6 = inlined_call_operand.vmem [shape: f32[2,9,256], index: 6, kind: input, shape index: {}]   ;;  %s5315_s7 = inlined_call_operand.hbm [shape: f32[2,256], index: 7, kind: input, shape index: {}]   ;;  %s5316_s8 = inlined_call_operand.vmem [shape: f32[2,2,8], index: 8, kind: output, shape index: {}]  }
   0x1   :  { %14 = vsyncpa [#allocation5], 0 }
   0x2   :  { %15 = vsyncpa [#allocation8], 0  ;;  %s4857_s27 = smov 0  }
   0x3 LB: > { %s4804_s28 = smov [#allocation4]   ;;  %s4863_s30 = sadd.s32 4294967295, %s4802_s27   ;;  %s4802_s27 = sphi %s4857_s27, %s21_s27  }
   0x4   : > { %s259_s29 = sshll.u32 %s4804_s28, 4  ;;  %p3691_p0 = scmp.ge.s32.totalorder %s4802_s27, 1  ;;  %s4868_s29 = int_to_ptr.vmem [resolvable:$true] %s259_s29 }
   0x5   : > { %p235_p1 = scmp.lt.s32.totalorder %s4802_s27, 3  ;;  %p5317_p2 = scmp.eq.s32.totalorder %s4863_s30, 0 }
   0x6   : > { %s4805_s10 = smov [#allocation2]   ;;  %s4806_s12 = smov [#allocation6]  }
   0x7   : > { %p4870_p3 = pnand %p3691_p0, %p235_p1  ;;  %s248_s11 = sshll.u32 %s4805_s10, 4  ;;  %s4876_s11 = int_to_ptr.vmem [resolvable:$true] %s248_s11 }
   0x8   : > { %s269_s13 = sshll.u32 %s4806_s12, 4  ;;  %s4807_s15 = smov [#allocation7]   ;;  %s4884_s13 = int_to_ptr.vmem [resolvable:$true] %s269_s13 }
   0x9   : > { %s5319_s9 = scalar_select %p4870_p3, 1, 0 }
   0xa   : > { %p4126_p4 = pneg %p4870_p3  ;;  %s4886_s16 = sshll.u32 %s4807_s15, 4  ;;  %s287_s16 = int_to_ptr.vmem [resolvable:$true] %s4886_s16 }
   0xb   : > { %s4672_s19 = scalar_lea.hbm %s5310_s2, 256 }
   0xc   : > { %p4880_p5 = pnand %p5317_p2, %p4126_p4  ;;  %p4673_p6 = scmp.ne.s32.totalorder %s5310_s2, %s4672_s19 }
   0xd   : > { %p4679_p10 = scmp.lt.u32.totalorder %s4672_s19, %s5310_s2 }
   0xe   : > { %p4896_p7 = pneg %p4880_p5 }
  0x10   : > { %p4675_p8 = pnand %p4896_p7, %p4673_p6 }
  0x12   : > { %p4676_p9 = pneg %p4675_p8 }
  0x14   : > { %p4681_p11 = pnand %p4679_p10, %p4676_p9 }
  0x16   : > { %4684 = shalt.err (!%p4681_p11)
}
  0x17   : > { %s4685_s25 = scalar_lea.vmem %s4868_s29, 256  ;;  %p4693_p1 = scmp.lt.s32.totalorder %s4868_s29, %s4868_s29 }
  0x18   : > { %p4686_p12 = scmp.ne.s32.totalorder %s4868_s29, %s4685_s25  ;;  %p4694_p4 = scmp.lt.s32.totalorder %s4685_s25, %s4685_s25 }
  0x1a   : > { %p4688_p13 = pnand %p4686_p12, %p4896_p7  ;;  %p4695_p6 = por %p4694_p4, %p4693_p1 }
  0x1c   : > { %p4689_p0 = pneg %p4688_p13 }
  0x1e   : > { %p4696_p8 = pnand %p4695_p6, %p4689_p0 }
  0x20   : > { %4699 = shalt.err (!%p4696_p8)
}
  0x21   : > { %4132 = dma.hbm_to_vmem [thread:$0]  (!%p4880_p5), %s5310_s2, 256, %s4868_s29, [#allocation5]  }
  0x22   : > { %s4700_s15 = scalar_lea.hbm %s5309_s1, 256 }
  0x23   : > { %p4701_p9 = scmp.ne.s32.totalorder %s5309_s1, %s4700_s15  ;;  %p4707_p12 = scmp.lt.u32.totalorder %s4700_s15, %s5309_s1 }
  0x25   : > { %p4703_p10 = pnand %p4701_p9, %p4896_p7 }
  0x27   : > { %p4704_p11 = pneg %p4703_p10 }
  0x29   : > { %p4709_p13 = pnand %p4707_p12, %p4704_p11 }
  0x2b   : > { %4712 = shalt.err (!%p4709_p13)
}
  0x2c   : > { %s4713_s29 = scalar_lea.vmem %s4876_s11, 256  ;;  %p4721_p6 = scmp.lt.s32.totalorder %s4876_s11, %s4876_s11 }
  0x2d   : > { %p4714_p0 = scmp.ne.s32.totalorder %s4876_s11, %s4713_s29  ;;  %p4722_p8 = scmp.lt.s32.totalorder %s4713_s29, %s4713_s29 }
  0x2f   : > { %p4716_p1 = pnand %p4714_p0, %p4896_p7  ;;  %p4723_p9 = por %p4722_p8, %p4721_p6 }
  0x31   : > { %p4717_p4 = pneg %p4716_p1 }
  0x33   : > { %p4724_p10 = pnand %p4723_p9, %p4717_p4 }
  0x35   : > { %4727 = shalt.err (!%p4724_p10)
}
  0x36   : > { %4129 = dma.hbm_to_vmem [thread:$0]  (!%p4880_p5), %s5309_s1, 256, %s4876_s11, [#allocation3]  }
  0x37   : > { %s4728_s26 = scalar_lea.hbm %s5313_s5, 40960 }
  0x38   : > { %p4729_p11 = scmp.ne.s32.totalorder %s5313_s5, %s4728_s26  ;;  %p4735_p0 = scmp.lt.u32.totalorder %s4728_s26, %s5313_s5 }
  0x3a   : > { %p4731_p12 = pnand %p4729_p11, %p4896_p7 }
  0x3c   : > { %p4732_p13 = pneg %p4731_p12 }
  0x3e   : > { %p4737_p1 = pnand %p4735_p0, %p4732_p13 }
  0x40   : > { %4740 = shalt.err (!%p4737_p1)
}
  0x41   : > { %s4741_s11 = scalar_lea.vmem %s4884_s13, 40960  ;;  %p4749_p9 = scmp.lt.s32.totalorder %s4884_s13, %s4884_s13 }
  0x42   : > { %p4742_p4 = scmp.ne.s32.totalorder %s4884_s13, %s4741_s11  ;;  %p4750_p10 = scmp.lt.s32.totalorder %s4741_s11, %s4741_s11 }
  0x44   : > { %p4744_p6 = pnand %p4742_p4, %p4896_p7  ;;  %p4751_p11 = por %p4750_p10, %p4749_p9 }
  0x46   : > { %p4745_p8 = pneg %p4744_p6 }
  0x48   : > { %p4752_p12 = pnand %p4751_p11, %p4745_p8 }
  0x4a   : > { %4755 = shalt.err (!%p4752_p12)
}
  0x4b   : > { %s4808_s17 = smov 128   ;;  %s4809_s18 = smov 8  }
  0x4c   : > { %4135 = dma.hbm_to_vmem [thread:$0]  (!%p4880_p5), %s5313_s5, 40960, %s4884_s13, [#allocation5], %s4808_s17, %s4808_s17, %s4809_s18  }
  0x4d   : > { %s4756_s23 = scalar_lea.hbm %s5315_s7, 64 }
  0x4e   : > { %p4757_p13 = scmp.ne.s32.totalorder %s5315_s7, %s4756_s23  ;;  %p4763_p4 = scmp.lt.u32.totalorder %s4756_s23, %s5315_s7 }
  0x50   : > { %p4759_p0 = pnand %p4757_p13, %p4896_p7 }
  0x52   : > { %p4760_p1 = pneg %p4759_p0 }
  0x54   : > { %p4765_p6 = pnand %p4763_p4, %p4760_p1 }
  0x56   : > { %4768 = shalt.err (!%p4765_p6)
}
  0x57   : > { %s4769_s10 = scalar_lea.vmem %s287_s16, 64  ;;  %p4777_p11 = scmp.lt.s32.totalorder %s287_s16, %s287_s16 }
  0x58   : > { %p4770_p8 = scmp.ne.s32.totalorder %s287_s16, %s4769_s10  ;;  %p4778_p12 = scmp.lt.s32.totalorder %s4769_s10, %s4769_s10 }
  0x5a   : > { %p4772_p9 = pnand %p4770_p8, %p4896_p7  ;;  %p4779_p2 = por %p4778_p12, %p4777_p11 }
  0x5c   : > { %p4773_p10 = pneg %p4772_p9 }
  0x5e   : > { %p4780_p3 = pnand %p4779_p2, %p4773_p10 }
  0x60   : > { %4783 = shalt.err (!%p4780_p3)
}
  0x61   : > { %4138 = dma.hbm_to_vmem [thread:$0]  (!%p4880_p5), %s5315_s7, 64, %s287_s16, [#allocation8]  }
  0x62   : > { %p5322_p13 = scmp.ne.s32.totalorder %s5319_s9, 0 }
  0x63   : > { %p5323_p0 = scmp.eq.s32.totalorder (!%p5322_p13), %s4863_s30, 0 }
  0x64   : > { %323 = sbr.rel (%p5322_p13) target bundleno = 5872 (0x16f0), region = 52 }
  0x6b   : > { %4789 = dma.done.wait (%p5323_p0), [#allocation3], 256   ;;  %p5324_p7 = pmov %p5323_p0 }
  0x6c   : > { %p5325_p1 = pmov %p5323_p0 }
  0x6d   : > { %4791 = vsyncadd (%p5324_p7), [#allocation3], 4294967040 }
  0x6e   : > { %4793 = dma.done.wait (%p5325_p1), [#allocation5], 41216   ;;  %p5326_p2 = pmov %p5323_p0 }
  0x6f   : > { %p5327_p3 = pmov %p5323_p0 }
  0x70   : > { %4795 = vsyncadd (%p5326_p2), [#allocation5], 4294926080 }
  0x71   : > { %4797 = dma.done.wait (%p5327_p3), [#allocation8], 64   ;;  %p5328_p5 = pmov %p5323_p0 }
  0x72   : > { %p378_p4 = scmp.lt.s32.totalorder %s4863_s30, 1  ;;  %v4163_v3 = vld [vmem:[#allocation6 + $0x104] ss:$8 sps:$4 sm:$0xff]   ;;  %v4165_v4 = vld [vmem:[#allocation6 + $0x100] ss:$8 sps:$4 sm:$0xff]   ;;  %v398_v50 = vlaneseq  ;;  %v4810_v55 = vmov 0.0  }
  0x73   : > { %4799 = vsyncadd (%p5328_p5), [#allocation8], 4294967232  ;;  %v4166_v5 = vld [vmem:[#allocation6 + $0x114] ss:$8 sps:$4 sm:$0xff]   ;;  %919 = vmatprep.subr.bf16.mxu1 %v4163_v3  ;;  %v4174_v6 = vld [vmem:[#allocation6 + $0x4] ss:$8 sps:$4 sm:$0xff]  }
  0x74   : > { %s5330_s30 = smov (!%p378_p4, %s4863_s30), 1  ;;  %920 = vmatpush1.bf16.msra.mxu1 %v4165_v4  ;;  %v4168_v7 = vld [vmem:[#allocation6 + $0x110] ss:$8 sps:$4 sm:$0xff]   ;;  %v4177_v8 = vld [vmem:[#allocation6] ss:$8 sps:$4 sm:$0xff]   ;;  %675 = vmatprep.subr.bf16.mxu0 %v4174_v6  ;;  %v5013_v51 = vand.u32 127, %v398_v50 }
  0x75   : > { %s5001_s9 = sshll.u32 %s5330_s30, 4  ;;  %v4180_v9 = vld [vmem:[#allocation6 + $0x14] ss:$8 sps:$4 sm:$0xff]   ;;  %921 = vmatprep.subr.bf16.mxu1 %v4166_v5  ;;  %v4169_v10 = vld [vmem:[#allocation6 + $0x124] ss:$8 sps:$4 sm:$0xff]   ;;  %676 = vmatpush1.bf16.msra.mxu0 %v4177_v8  ;;  %vm4811_vm2 = vmmov 0  }
  0x76   : > { %s382_s22 = scalar_lea.vmem %s5308_s0, %s5001_s9  ;;  %v4183_v11 = vld [vmem:[#allocation6 + $0x10] ss:$8 sps:$4 sm:$0xff]   ;;  %677 = vmatprep.subr.bf16.mxu0 %v4180_v9  ;;  %v4186_v12 = vld [vmem:[#allocation6 + $0x24] ss:$8 sps:$4 sm:$0xff]   ;;  %v4171_v13 = vld [vmem:[#allocation6 + $0x120] ss:$8 sps:$4 sm:$0xff]   ;;  %s387_s17 = scalar_lea.vmem %s5311_s3, %s5001_s9 }
  0x77   : > { %v5007_v0 = vld [vmem:[%s382_s22] sm:$0xff]  ;;  %v5009_v1 = vld [vmem:[%s382_s22 + $0x8] sm:$0xff]  ;;  %v4172_v14 = vld [vmem:[#allocation6 + $0x134] ss:$8 sps:$4 sm:$0xff]   ;;  %v400_v52 = vadd.s32 128, %v5013_v51  ;;  %vm403_vm0 = vcmp.lt.s32.totalorder %v5013_v51, 16  ;;  %s392_s22 = scalar_lea.vmem %s5312_s4, %s5001_s9 }
  0x78   : > { %v435_v2 = vadd.f32 %v5009_v1, %v5007_v0  ;;  %922 = vmatpush1.bf16.msra.mxu1 %v4168_v7  ;;  %v4189_v15 = vld [vmem:[#allocation6 + $0x20] ss:$8 sps:$4 sm:$0xff]   ;;  %v4192_v16 = vld [vmem:[#allocation6 + $0x34] ss:$8 sps:$4 sm:$0xff]   ;;  %v4176_v17 = vld [vmem:[#allocation6 + $0x130] ss:$8 sps:$4 sm:$0xff]  }
  0x79   : > { %923 = vmatprep.subr.bf16.mxu1 %v4169_v10  ;;  %678 = vmatpush1.bf16.msra.mxu0 %v4183_v11  ;;  %v4178_v18 = vld [vmem:[#allocation6 + $0x144] ss:$8 sps:$4 sm:$0xff]   ;;  %v4195_v19 = vld [vmem:[#allocation6 + $0x30] ss:$8 sps:$4 sm:$0xff]   ;;  %v4182_v20 = vld [vmem:[#allocation6 + $0x140] ss:$8 sps:$4 sm:$0xff]  }
  0x7a   : > { %436 = vadd.xlane.f32.xlu0 %v435_v2  ;;  %679 = vmatprep.subr.bf16.mxu0 %v4186_v12  ;;  %v4198_v21 = vld [vmem:[#allocation6 + $0x44] ss:$8 sps:$4 sm:$0xff]   ;;  %v4184_v22 = vld [vmem:[#allocation6 + $0x154] ss:$8 sps:$4 sm:$0xff]   ;;  %v4201_v23 = vld [vmem:[#allocation6 + $0x40] ss:$8 sps:$4 sm:$0xff]   ;;  %v750_v12 = vpack.c.bf16 %v5009_v1, %v5009_v1 }
  0x7b   : > { %v4204_v24 = vld [vmem:[#allocation6 + $0x54] ss:$8 sps:$4 sm:$0xff]   ;;  %v4188_v25 = vld [vmem:[#allocation6 + $0x150] ss:$8 sps:$4 sm:$0xff]   ;;  %v4190_v26 = vld [vmem:[#allocation6 + $0x164] ss:$8 sps:$4 sm:$0xff]  }
  0x7c   : > { %924 = vmatpush1.bf16.msra.mxu1 %v4171_v13  ;;  %v4207_v27 = vld [vmem:[#allocation6 + $0x50] ss:$8 sps:$4 sm:$0xff]   ;;  %v4210_v28 = vld [vmem:[#allocation6 + $0x64] ss:$8 sps:$4 sm:$0xff]   ;;  %v4194_v29 = vld [vmem:[#allocation6 + $0x160] ss:$8 sps:$4 sm:$0xff]   ;;  %951 = vmatprep.mubr.bf16.mxu1 %v750_v12 }
  0x7d   : > { %925 = vmatprep.subr.bf16.mxu1 %v4172_v14  ;;  %680 = vmatpush1.bf16.msra.mxu0 %v4189_v15  ;;  %v4196_v30 = vld [vmem:[#allocation6 + $0x174] ss:$8 sps:$4 sm:$0xff]   ;;  %v4213_v31 = vld [vmem:[#allocation6 + $0x60] ss:$8 sps:$4 sm:$0xff]   ;;  %v4200_v33 = vld [vmem:[#allocation6 + $0x170] ss:$8 sps:$4 sm:$0xff]  }
  0x7e   : > { %681 = vmatprep.subr.bf16.mxu0 %v4192_v16  ;;  %v4216_v32 = vld [vmem:[#allocation6 + $0x74] ss:$8 sps:$4 sm:$0xff]   ;;  %v4202_v34 = vld [vmem:[#allocation6 + $0x184] ss:$8 sps:$4 sm:$0xff]   ;;  %v4219_v35 = vld [vmem:[#allocation6 + $0x70] ss:$8 sps:$4 sm:$0xff]   ;;  %v5031_v16 = vpack.c.bf16 %v5007_v0, %v5007_v0 }
  0x7f   : > { %v4222_v36 = vld [vmem:[#allocation6 + $0x84] ss:$8 sps:$4 sm:$0xff]   ;;  %v4206_v37 = vld [vmem:[#allocation6 + $0x180] ss:$8 sps:$4 sm:$0xff]   ;;  %v4208_v38 = vld [vmem:[#allocation6 + $0x194] ss:$8 sps:$4 sm:$0xff]  }
  0x80   : > { %926 = vmatpush1.bf16.msra.mxu1 %v4176_v17  ;;  %v4225_v39 = vld [vmem:[#allocation6 + $0x80] ss:$8 sps:$4 sm:$0xff]   ;;  %v4228_v40 = vld [vmem:[#allocation6 + $0x94] ss:$8 sps:$4 sm:$0xff]   ;;  %v4212_v41 = vld [vmem:[#allocation6 + $0x190] ss:$8 sps:$4 sm:$0xff]  }
  0x81   : > { %927 = vmatprep.subr.bf16.mxu1 %v4178_v18  ;;  %682 = vmatpush1.bf16.msra.mxu0 %v4195_v19  ;;  %v4214_v42 = vld [vmem:[#allocation6 + $0x1a4] ss:$8 sps:$4 sm:$0xff]   ;;  %v4231_v43 = vld [vmem:[#allocation6 + $0x90] ss:$8 sps:$4 sm:$0xff]   ;;  %v4218_v44 = vld [vmem:[#allocation6 + $0x1a0] ss:$8 sps:$4 sm:$0xff]  }
  0x82   : > { %683 = vmatprep.subr.bf16.mxu0 %v4198_v21  ;;  %v4220_v45 = vld [vmem:[#allocation6 + $0x1b4] ss:$8 sps:$4 sm:$0xff]   ;;  %v4224_v46 = vld [vmem:[#allocation6 + $0x1b0] ss:$8 sps:$4 sm:$0xff]   ;;  %v4226_v47 = vld [vmem:[#allocation6 + $0x1c4] ss:$8 sps:$4 sm:$0xff]  }
  0x83   : > { %v4230_v48 = vld [vmem:[#allocation6 + $0x1c0] ss:$8 sps:$4 sm:$0xff]   ;;  %v4232_v49 = vld [vmem:[#allocation6 + $0x1d4] ss:$8 sps:$4 sm:$0xff]   ;;  %vm414_vm1 = vcmp.lt.s32.totalorder %v400_v52, 144  ;;  %v5018_v56 = vsel %vm403_vm0, 1.0, %v4810_v55 }
  0x84   : > { %928 = vmatpush1.bf16.msra.mxu1 %v4182_v20  ;;  %v5021_v57 = vsel %vm414_vm1, 1.0, %v4810_v55  ;;  %v4234_v3 = vld [vmem:[#allocation6 + $0xa4] ss:$8 sps:$4 sm:$0xff]   ;;  %v4236_v4 = vld [vmem:[#allocation6 + $0x1d0] ss:$8 sps:$4 sm:$0xff]   ;;  %vm1254_vm4 = vcmask 64512  }
  0x85   : > { %929 = vmatprep.subr.bf16.mxu1 %v4184_v22  ;;  %684 = vmatpush1.bf16.msra.mxu0 %v4201_v23  ;;  %v4237_v5 = vld [vmem:[#allocation6 + $0xa0] ss:$8 sps:$4 sm:$0xff]   ;;  %v4238_v6 = vld [vmem:[#allocation6 + $0x1e4] ss:$8 sps:$4 sm:$0xff]   ;;  %v4240_v7 = vld [vmem:[#allocation6 + $0xb4] ss:$8 sps:$4 sm:$0xff]  }
  0x86   : > { %685 = vmatprep.subr.bf16.mxu0 %v4204_v24  ;;  %v4242_v8 = vld [vmem:[#allocation6 + $0x1e0] ss:$8 sps:$4 sm:$0xff]   ;;  %v4243_v9 = vld [vmem:[#allocation6 + $0xb0] ss:$8 sps:$4 sm:$0xff]   ;;  %v4244_v10 = vld [vmem:[#allocation6 + $0x1f4] ss:$8 sps:$4 sm:$0xff]  }
  0x87   : > { %v4246_v11 = vld [vmem:[#allocation6 + $0xc4] ss:$8 sps:$4 sm:$0xff]   ;;  %v4248_v13 = vld [vmem:[#allocation6 + $0x1f0] ss:$8 sps:$4 sm:$0xff]   ;;  %v4249_v14 = vld [vmem:[#allocation6 + $0xc0] ss:$8 sps:$4 sm:$0xff]  }
  0x88   : > { %930 = vmatpush1.bf16.msra.mxu1 %v4188_v25  ;;  %v4250_v15 = vld [vmem:[#allocation6 + $0xd4] ss:$8 sps:$4 sm:$0xff]   ;;  %v4252_v17 = vld [vmem:[#allocation6 + $0xd0] ss:$8 sps:$4 sm:$0xff]   ;;  %v4253_v18 = vld [vmem:[#allocation6 + $0xe4] ss:$8 sps:$4 sm:$0xff]  }
  0x89   : > { %931 = vmatprep.subr.bf16.mxu1 %v4190_v26  ;;  %686 = vmatpush1.bf16.msra.mxu0 %v4207_v27  ;;  %v4256_v19 = vld [vmem:[#allocation6 + $0xf4] ss:$8 sps:$4 sm:$0xff]   ;;  %v4258_v20 = vld [vmem:[#allocation6 + $0xf0] ss:$8 sps:$4 sm:$0xff]   ;;  %v5035_v23 = vshrl.u32 %v398_v50, 7  ;;  %v5043_v25 = vld [vmem:[%s5314_s6 + $0x8] sm:$0xff] }
  0x8a   : > { %687 = vmatprep.subr.bf16.mxu0 %v4210_v28  ;;  %v5048_v26 = vld [vmem:[%s5314_s6] sm:$0xff]  ;;  %vm1270_vm5 = vcmask 1043456   ;;  %vm3535_vm6 = vcmask 7168   ;;  %s3708_s9 = sshll.u32 %s5330_s30, 1  ;;  %vm3569_vm7 = vcmask 58368  }
  0x8b   : > { %v5038_v24 = vsub.s32 0, %v5035_v23  ;;  %v5051_v27 = vsub.s32 1, %v5035_v23  ;;  %v5080_v52 = vsub.s32 2, %v5035_v23  ;;  %vm429_vm3 = vcmp.gt.s32.totalorder %v5013_v51, %v5035_v23  ;;  %s396_s20 = scalar_lea.vmem %s5316_s8, %s3708_s9 }
  0x8c   : > { %932 = vmatpush1.bf16.msra.mxu1 %v4194_v29 }
  0x8d   : > { %933 = vmatprep.subr.bf16.mxu1 %v4196_v30  ;;  %688 = vmatpush1.bf16.msra.mxu0 %v4213_v31  ;;  %v460_v28 = vrot.slane %v5043_v25, %v5038_v24  ;;  %v456_v29 = vrot.slane %v5048_v26, %v5038_v24 }
  0x8e   : > { %689 = vmatprep.subr.bf16.mxu0 %v4216_v32  ;;  %v470_v32 = vrot.slane %v5043_v25, %v5051_v27 }
  0x90   : > { %934 = vmatpush1.bf16.msra.mxu1 %v4200_v33 }
  0x91   : > { %935 = vmatprep.subr.bf16.mxu1 %v4202_v34  ;;  %690 = vmatpush1.bf16.msra.mxu0 %v4219_v35  ;;  %v466_v34 = vrot.slane %v5048_v26, %v5051_v27 }
  0x92   : > { %691 = vmatprep.subr.bf16.mxu0 %v4222_v36 }
  0x94   : > { %936 = vmatpush1.bf16.msra.mxu1 %v4206_v37 }
  0x95   : > { %937 = vmatprep.subr.bf16.mxu1 %v4208_v38  ;;  %692 = vmatpush1.bf16.msra.mxu0 %v4225_v39 }
  0x96   : > { %693 = vmatprep.subr.bf16.mxu0 %v4228_v40 }
  0x98   : > { %938 = vmatpush1.bf16.msra.mxu1 %v4212_v41  ;;  %v5070_v41 = vsub.s32 3, %v5035_v23 }
  0x99   : > { %939 = vmatprep.subr.bf16.mxu1 %v4214_v42  ;;  %694 = vmatpush1.bf16.msra.mxu0 %v4231_v43  ;;  %v423_v43 = vld [vmem:[#allocation2] sm:$0xff] }
  0x9a   : > { %695 = vmatprep.subr.bf16.mxu0 %v4234_v3  ;;  %v754_v42 = vrot.slane %v5048_v26, %v5070_v41  ;;  %v4264_v3 = vld [vmem:[#allocation6 + $0x214] ss:$8 sps:$4 sm:$0xff]  }
  0x9c   : > { %940 = vmatpush1.bf16.msra.mxu1 %v4218_v44 }
  0x9d   : > { %941 = vmatprep.subr.bf16.mxu1 %v4220_v45  ;;  %696 = vmatpush1.bf16.msra.mxu0 %v4237_v5  ;;  %v4267_v5 = vld [vmem:[#allocation6 + $0x224] ss:$8 sps:$4 sm:$0xff]  }
  0x9e   : > { %697 = vmatprep.subr.bf16.mxu0 %v4240_v7  ;;  %v4270_v7 = vld [vmem:[#allocation6 + $0x234] ss:$8 sps:$4 sm:$0xff]  }
  0xa0   : > { %942 = vmatpush1.bf16.msra.mxu1 %v4224_v46 }
  0xa1   : > { %943 = vmatprep.subr.bf16.mxu1 %v4226_v47  ;;  %698 = vmatpush1.bf16.msra.mxu0 %v4243_v9  ;;  %v4273_v9 = vld [vmem:[#allocation6 + $0x244] ss:$8 sps:$4 sm:$0xff]  }
  0xa2   : > { %699 = vmatprep.subr.bf16.mxu0 %v4246_v11  ;;  %v4276_v11 = vld [vmem:[#allocation6 + $0x254] ss:$8 sps:$4 sm:$0xff]  }
  0xa4   : > { %944 = vmatpush1.bf16.msra.mxu1 %v4230_v48 }
  0xa5   : > { %945 = vmatprep.subr.bf16.mxu1 %v4232_v49  ;;  %700 = vmatpush1.bf16.msra.mxu0 %v4249_v14  ;;  %v4277_v14 = vld [vmem:[#allocation6 + $0x260] ss:$8 sps:$4 sm:$0xff]  }
  0xa6   : > { %701 = vmatprep.subr.bf16.mxu0 %v4250_v15  ;;  %v4282_v15 = vld [vmem:[#allocation6 + $0x274] ss:$8 sps:$4 sm:$0xff]  }
  0xa8   : > { %946 = vmatpush1.bf16.msra.mxu1 %v4236_v4  ;;  %v4262_v4 = vld [vmem:[#allocation6 + $0x210] ss:$8 sps:$4 sm:$0xff]  }
  0xa9   : > { %947 = vmatprep.subr.bf16.mxu1 %v4238_v6  ;;  %702 = vmatpush1.bf16.msra.mxu0 %v4252_v17  ;;  %v4265_v6 = vld [vmem:[#allocation6 + $0x220] ss:$8 sps:$4 sm:$0xff]   ;;  %v4280_v17 = vld [vmem:[#allocation6 + $0x270] ss:$8 sps:$4 sm:$0xff]  }
  0xaa   : > { %703 = vmatprep.subr.bf16.mxu0 %v4253_v18  ;;  %v4285_v18 = vld [vmem:[#allocation6 + $0x284] ss:$8 sps:$4 sm:$0xff]  }
  0xac   : > { %948 = vmatpush1.bf16.msra.mxu1 %v4242_v8  ;;  %v4268_v8 = vld [vmem:[#allocation6 + $0x230] ss:$8 sps:$4 sm:$0xff]  }
  0xad   : > { %949 = vmatprep.subr.bf16.mxu1 %v4244_v10  ;;  %v4271_v10 = vld [vmem:[#allocation6 + $0x240] ss:$8 sps:$4 sm:$0xff]  }
  0xb0   : > { %950 = vmatpush1.bf16.msra.mxu1 %v4248_v13  ;;  %v4279_v13 = vld [vmem:[#allocation6 + $0x264] ss:$8 sps:$4 sm:$0xff]  }
  0xb1   : > { %4062 = vmatprep.subr.bf16.mxu1 %v4810_v55 }
  0xb3   : > { %952 = vmatmul.mubr.bf16.vlgmr.msra.gmra.mrb[0].mxu1 %v5031_v16 }
  0xb4   : > { %4064 = vmatprep.mubr.msk.bf16.mxu1 %vm4811_vm2, %v4810_v55 }
 0x107   : > { %v437_v53 = vpop.xlane.xlu0 %436 }
 0x108   : > { %v438_v54 = vmul.f32 0.03125, %v437_v53  ;;  %v510_v53 = vrot.slane %v5048_v26, %v5080_v52 }
 0x10a   : > { %v439_v58 = vsub.f32 %v5007_v0, %v438_v54  ;;  %v440_v59 = vsub.f32 %v5009_v1, %v438_v54  ;;  %v4255_v1 = vld [vmem:[#allocation6 + $0xe0] ss:$8 sps:$4 sm:$0xff]  }
 0x10b   : > { %704 = vmatpush1.bf16.msra.mxu0 %v4255_v1  ;;  %v4283_v1 = vld [vmem:[#allocation6 + $0x280] ss:$8 sps:$4 sm:$0xff]  }
 0x10c   : > { %v441_v60 = vmul.f32 %v439_v58, %v5018_v56  ;;  %v442_v61 = vmul.f32 %v440_v59, %v5021_v57  ;;  %705 = vmatprep.subr.bf16.mxu0 %v4256_v19  ;;  %v4288_v19 = vld [vmem:[#allocation6 + $0x294] ss:$8 sps:$4 sm:$0xff]  }
 0x10e   : > { %v443_v62 = vmul.f32 %v441_v60, %v441_v60  ;;  %v444_v63 = vmul.f32 %v442_v61, %v442_v61 }
 0x10f   : > { %706 = vmatpush1.bf16.msra.mxu0 %v4258_v20  ;;  %v4286_v20 = vld [vmem:[#allocation6 + $0x290] ss:$8 sps:$4 sm:$0xff]  }
 0x110   : > { %v445_v2 = vadd.f32 %v444_v63, %v443_v62  ;;  %v4259_v63 = vld [vmem:[#allocation6 + $0x200] ss:$8 sps:$4 sm:$0xff]  }
 0x112   : > { %446 = vadd.xlane.f32.xlu0 %v445_v2  ;;  %v4261_v2 = vld [vmem:[#allocation6 + $0x204] ss:$8 sps:$4 sm:$0xff]  }
 0x113   : > { %1161 = vmatprep.subr.bf16.mxu0 %v4261_v2 }
 0x186   : > { %v953_v44 = vpop.f32.mrb[0].mxu1 }
 0x187   : > { %v954_v45 = vadd.f32 %v953_v44, %v754_v42  ;;  %v5074_v46 = vpop.f32.mrb[1].mxu1 }
 0x188   : > { %v957_v47 = vpop.f32.mrb[2].mxu1 }
 0x189   : > { %v1204_v48 = vadd.f32 %v954_v45, %v423_v43  ;;  %v958_v49 = vpop.f32.mrb[3].mxu1 }
 0x18b   : > { %v1206_v50 = vpack.c.bf16 %v1204_v48, %v1204_v48 }
 0x18d   : > { %4063 = vmatpush3.bf16.xpose.msra.mxu1 %v1206_v50 }
 0x18e   : > { %4068 = vmatprep.subr.bf16.mxu1 %v4810_v55 }
 0x19f   : > { %v447_v21 = vpop.xlane.xlu0 %446 }
 0x1a0   : > { %v448_v0 = vmul.f32 0.03125, %v447_v21  ;;  %v4291_v21 = vld [vmem:[#allocation6 + $0x2a4] ss:$8 sps:$4 sm:$0xff]  }
 0x1a2   : > { %v449_v22 = vadd.f32 1e-08, %v448_v0  ;;  %v4289_v0 = vld [vmem:[#allocation6 + $0x2a0] ss:$8 sps:$4 sm:$0xff]  }
 0x1a4   : > { %4643 = vrsqrt.f32 %v449_v22  ;;  %v4294_v22 = vld [vmem:[#allocation6 + $0x2b4] ss:$8 sps:$4 sm:$0xff]  }
 0x1ae   : > { %v4644_v30 = vpop.eup %4643 }
 0x1af   : > { %v452_v31 = vmul.f32 %v4644_v30, %v442_v61  ;;  %v451_v33 = vmul.f32 %v4644_v30, %v441_v60  ;;  %v4295_v30 = vld [vmem:[#allocation6 + $0x2c0] ss:$8 sps:$4 sm:$0xff]  }
 0x1b1   : > { %v462_v35 = vmul.f32 %v460_v28, %v452_v31  ;;  %v461_v36 = vmul.f32 %v456_v29, %v451_v33  ;;  %v4292_v28 = vld [vmem:[#allocation6 + $0x2b0] ss:$8 sps:$4 sm:$0xff]   ;;  %v4297_v29 = vld [vmem:[#allocation6 + $0x2c4] ss:$8 sps:$4 sm:$0xff]   ;;  %v4300_v31 = vld [vmem:[#allocation6 + $0x2d4] ss:$8 sps:$4 sm:$0xff]  }
 0x1b2   : > { %v4303_v33 = vld [vmem:[#allocation6 + $0x2e4] ss:$8 sps:$4 sm:$0xff]  }
 0x1b3   : > { %v5061_v37 = vadd.f32 %v470_v32, %v462_v35  ;;  %v5063_v38 = vadd.f32 %v466_v34, %v461_v36  ;;  %v4298_v32 = vld [vmem:[#allocation6 + $0x2d0] ss:$8 sps:$4 sm:$0xff]   ;;  %v4301_v34 = vld [vmem:[#allocation6 + $0x2e0] ss:$8 sps:$4 sm:$0xff]   ;;  %v4306_v35 = vld [vmem:[#allocation6 + $0x2f4] ss:$8 sps:$4 sm:$0xff]  }
 0x1b4   : > { %v4304_v36 = vld [vmem:[#allocation6 + $0x2f0] ss:$8 sps:$4 sm:$0xff]  }
 0x1b5   : > { %v506_v39 = vpack.c.bf16 %v5061_v37, %v5061_v37  ;;  %v505_v40 = vpack.c.bf16 %v5063_v38, %v5063_v38 }
 0x1b7   : > { %707 = vmatprep.mubr.bf16.mxu0 %v506_v39 }
 0x1b8   : > { %708 = vmatmul.mubr.bf16.vlgmr.msra.gmra.mrb[0].mxu0 %v505_v40  ;;  %v5092_v40 = vsel %vm429_vm3, -4.2949673e+09, %v4810_v55 }
 0x1b9   : > { %1193 = vmatprep.mubr.bf16.mxu0 %v750_v12  ;;  %1162 = vmatpush1.bf16.msra.mxu0 %v4259_v63  ;;  %v4274_v12 = vld [vmem:[#allocation6 + $0x250] ss:$8 sps:$4 sm:$0xff]  }
 0x1ba   : > { %1163 = vmatprep.subr.bf16.mxu0 %v4264_v3  ;;  %v5102_v3 = vld [vmem:[#allocation4] sm:$0xff] }
 0x1bd   : > { %1164 = vmatpush1.bf16.msra.mxu0 %v4262_v4 }
 0x1be   : > { %1165 = vmatprep.subr.bf16.mxu0 %v4267_v5 }
 0x1c1   : > { %1166 = vmatpush1.bf16.msra.mxu0 %v4265_v6 }
 0x1c2   : > { %1167 = vmatprep.subr.bf16.mxu0 %v4270_v7 }
 0x1c5   : > { %1168 = vmatpush1.bf16.msra.mxu0 %v4268_v8  ;;  %v758_v8 = vrot.slane %v5043_v25, %v5070_v41 }
 0x1c6   : > { %1169 = vmatprep.subr.bf16.mxu0 %v4273_v9 }
 0x1c7   : > { %v956_v9 = vadd.f32 %v5074_v46, %v758_v8  ;;  %v4313_v8 = vld [vmem:[#allocation6 + $0x320] ss:$8 sps:$4 sm:$0xff]  }
 0x1c9   : > { %1170 = vmatpush1.bf16.msra.mxu0 %v4271_v10  ;;  %v424_v10 = vld [vmem:[#allocation2 + $0x8] sm:$0xff] }
 0x1ca   : > { %1171 = vmatprep.subr.bf16.mxu0 %v4276_v11 }
 0x1cd   : > { %1172 = vmatpush1.bf16.msra.mxu0 %v4274_v12 }
 0x1ce   : > { %1173 = vmatprep.subr.bf16.mxu0 %v4279_v13  ;;  %v1205_v13 = vadd.f32 %v956_v9, %v424_v10  ;;  %v4318_v9 = vld [vmem:[#allocation6 + $0x334] ss:$8 sps:$4 sm:$0xff]   ;;  %v4319_v10 = vld [vmem:[#allocation6 + $0x340] ss:$8 sps:$4 sm:$0xff]  }
 0x1d1   : > { %1174 = vmatpush1.bf16.msra.mxu0 %v4277_v14 }
 0x1d2   : > { %1175 = vmatprep.subr.bf16.mxu0 %v4282_v15 }
 0x1d5   : > { %1176 = vmatpush1.bf16.msra.mxu0 %v4280_v17  ;;  %v426_v17 = vld [vmem:[#allocation4 + $0x8] sm:$0xff] }
 0x1d6   : > { %1177 = vmatprep.subr.bf16.mxu0 %v4285_v18  ;;  %v514_v18 = vrot.slane %v5043_v25, %v5080_v52 }
 0x1d9   : > { %1178 = vmatpush1.bf16.msra.mxu0 %v4283_v1 }
 0x1da   : > { %1179 = vmatprep.subr.bf16.mxu0 %v4288_v19  ;;  %v1207_v19 = vpack.c.bf16 %v1205_v13, %v1205_v13  ;;  %v4327_v13 = vld [vmem:[#allocation6 + $0x364] ss:$8 sps:$4 sm:$0xff]  }
 0x1dd   : > { %1180 = vmatpush1.bf16.msra.mxu0 %v4286_v20 }
 0x1de   : > { %1181 = vmatprep.subr.bf16.mxu0 %v4291_v21 }
 0x1e1   : > { %1182 = vmatpush1.bf16.msra.mxu0 %v4289_v0 }
 0x1e2   : > { %1183 = vmatprep.subr.bf16.mxu0 %v4294_v22 }
 0x1e5   : > { %1184 = vmatpush1.bf16.msra.mxu0 %v4292_v28 }
 0x1e6   : > { %1185 = vmatprep.subr.bf16.mxu0 %v4297_v29 }
 0x1e9   : > { %1186 = vmatpush1.bf16.msra.mxu0 %v4295_v30 }
 0x1ea   : > { %1187 = vmatprep.subr.bf16.mxu0 %v4300_v31 }
 0x1ed   : > { %1188 = vmatpush1.bf16.msra.mxu0 %v4298_v32 }
 0x1ee   : > { %1189 = vmatprep.subr.bf16.mxu0 %v4303_v33 }
 0x1f1   : > { %1190 = vmatpush1.bf16.msra.mxu0 %v4301_v34 }
 0x1f2   : > { %1191 = vmatprep.subr.bf16.mxu0 %v4306_v35 }
 0x1f5   : > { %1192 = vmatpush1.bf16.msra.mxu0 %v4304_v36 }
 0x1f8   : > { %1194 = vmatmul.mubr.bf16.vlgmr.msra.gmra.mrb[4].mxu0 %v5031_v16 }
 0x28b   : > { %v709_v54 = vpop.f32.mrb[0].mxu0 }
 0x28c   : > { %v710_v58 = vadd.f32 %v709_v54, %v510_v53  ;;  %v5084_v59 = vpop.f32.mrb[1].mxu0 }
 0x28d   : > { %v713_v60 = vpop.f32.mrb[2].mxu0  ;;  %v712_v46 = vadd.f32 %v5084_v59, %v514_v18  ;;  %v4333_v18 = vld [vmem:[#allocation6 + $0x384] ss:$8 sps:$4 sm:$0xff]  }
 0x28e   : > { %v1202_v61 = vpack.c.bf16 %v710_v58, %v710_v58  ;;  %v714_v62 = vpop.f32.mrb[3].mxu0 }
 0x28f   : > { %v5098_v62 = vsub.s32 4, %v5035_v23  ;;  %v1203_v0 = vpack.c.bf16 %v712_v46, %v712_v46 }
 0x290   : > { %4065 = vmatmul.mubr.bf16.vlgmr.msra.gmra.mrb[4].mxu1 %v1202_v61 }
 0x291   : > { %4070 = vmatprep.mubr.msk.bf16.mxu1 %vm4811_vm2, %v4810_v55  ;;  %v996_v63 = vrot.slane %v5048_v26, %v5098_v62  ;;  %v1000_v11 = vrot.slane %v5043_v25, %v5098_v62 }
 0x2cb   : > { %v1195_v53 = vpop.f32.mrb[4].mxu0 }
 0x2cc   : > { %v1197_v51 = vpop.f32.mrb[5].mxu0  ;;  %v1196_v2 = vadd.f32 %v1195_v53, %v996_v63 }
 0x2cd   : > { %v1199_v54 = vpop.f32.mrb[6].mxu0  ;;  %v1198_v14 = vadd.f32 %v1197_v51, %v1000_v11  ;;  %v4324_v11 = vld [vmem:[#allocation6 + $0x354] ss:$8 sps:$4 sm:$0xff]  }
 0x2ce   : > { %v1200_v58 = vpop.f32.mrb[7].mxu0  ;;  %v1208_v4 = vadd.f32 %v1196_v2, %v5102_v3  ;;  %v4307_v2 = vld [vmem:[#allocation6 + $0x300] ss:$8 sps:$4 sm:$0xff]  }
 0x2cf   : > { %v1209_v20 = vadd.f32 %v1198_v14, %v426_v17  ;;  %v4325_v14 = vld [vmem:[#allocation6 + $0x360] ss:$8 sps:$4 sm:$0xff]   ;;  %v4328_v17 = vld [vmem:[#allocation6 + $0x370] ss:$8 sps:$4 sm:$0xff]  }
 0x2d0   : > { %v1210_v5 = vpack.c.bf16 %v1208_v4, %v1208_v4  ;;  %v4309_v4 = vld [vmem:[#allocation6 + $0x304] ss:$8 sps:$4 sm:$0xff]  }
 0x2d1   : > { %v1211_v21 = vpack.c.bf16 %v1209_v20, %v1209_v20  ;;  %v4334_v20 = vld [vmem:[#allocation6 + $0x390] ss:$8 sps:$4 sm:$0xff]  }
 0x2d2   : > { %v1272_v6 = vsel %vm1270_vm5, %v1210_v5, 0  ;;  %v4312_v5 = vld [vmem:[#allocation6 + $0x314] ss:$8 sps:$4 sm:$0xff]  }
 0x2d3   : > { %4069 = vmatpush3.bf16.msra.mxu1 %v1272_v6  ;;  %v1372_v22 = vsel %vm1270_vm5, %v1211_v21, 0  ;;  %v4310_v6 = vld [vmem:[#allocation6 + $0x310] ss:$8 sps:$4 sm:$0xff]  }
 0x2d4   : > { %4074 = vmatprep.subr.bf16.mxu1 %v4810_v55 }
 0x363   : > { %v1246_v39 = vpop.f32.mrb[4].mxu1 }
 0x364   : > { %v1252_v42 = vmul.f32 0.25, %v1246_v39  ;;  %v4066_v43 = vpop.f32.mrb[5].mxu1 }
 0x365   : > { %v1249_v44 = vpop.f32.mrb[6].mxu1 }
 0x366   : > { %v4067_v45 = vpop.f32.mrb[7].mxu1  ;;  %v1253_v47 = vadd.f32 %v1252_v42, %v5092_v40 }
 0x368   : > { %v1255_v48 = vsel %vm1254_vm4, %v1253_v47, -inf }
 0x369   : > { %1256 = vmax.xlane.f32.xlu1 %v1255_v48 }
 0x3f6   : > { %v1257_v49 = vpop.xlane.xlu1 %1256 }
 0x3f7   : > { %v1258_v50 = vsub.f32 %v1253_v47, %v1257_v49 }
 0x3f9   : > { %v1259_v16 = vmul.f32 1.442695, %v1258_v50 }
 0x3fb   : > { %4645 = vpow2.f32 %v1259_v16 }
 0x405   : > { %v4646_v60 = vpop.eup %4645 }
 0x406   : > { %v1261_v61 = vsel %vm1254_vm4, %v4646_v60, 0.0 }
 0x407   : > { %1262 = vadd.xlane.f32.xlu1 %v1261_v61 }
 0x494   : > { %v1263_v7 = vpop.xlane.xlu1 %1262 }
 0x495   : > { %4647 = vrcp.f32 %v1263_v7  ;;  %v4315_v7 = vld [vmem:[#allocation6 + $0x324] ss:$8 sps:$4 sm:$0xff]  }
 0x49f   : > { %v4648_v12 = vpop.eup %4647 }
 0x4a0   : > { %v1265_v15 = vmul.f32 %v4648_v12, %v4646_v60  ;;  %v4322_v12 = vld [vmem:[#allocation6 + $0x350] ss:$8 sps:$4 sm:$0xff]  }
 0x4a2   : > { %v1266_v1 = vpack.c.bf16 %v1265_v15, %v1265_v15  ;;  %v4330_v15 = vld [vmem:[#allocation6 + $0x374] ss:$8 sps:$4 sm:$0xff]  }
 0x4a4   : > { %4071 = vmatmul.mubr.msk.bf16.vlgmr.msra.gmra.mrb[8].mxu1 %vm1254_vm4, %v1266_v1  ;;  %v4331_v1 = vld [vmem:[#allocation6 + $0x380] ss:$8 sps:$4 sm:$0xff]  }
 0x4a5   : > { %4075 = vmatpush3.bf16.xpose.msra.mxu1 %v1207_v19  ;;  %4076 = vmatprep.mubr.msk.bf16.mxu1 %vm4811_vm2, %v4810_v55  ;;  %v4336_v19 = vld [vmem:[#allocation6 + $0x394] ss:$8 sps:$4 sm:$0xff]  }
 0x4a6   : > { %4080 = vmatprep.subr.bf16.mxu1 %v4810_v55 }
 0x4ac   : > { %4077 = vmatmul.mubr.bf16.vlgmr.msra.gmra.mrb[12].mxu1 %v1203_v0 }
 0x4ad   : > { %4081 = vmatpush3.bf16.msra.mxu1 %v1372_v22  ;;  %4082 = vmatprep.mubr.msk.bf16.mxu1 %vm4811_vm2, %v4810_v55 }
 0x4ae   : > { %1657 = vmatprep.subr.bf16.mxu1 %v4309_v4  ;;  %v4370_v4 = vld [vmem:[#allocation6 + $0x450] ss:$8 sps:$4 sm:$0xff]  }
 0x577   : > { %v1308_v28 = vpop.f32.mrb[8].mxu1 }
 0x578   : > { %v4072_v29 = vpop.f32.mrb[9].mxu1  ;;  %v1414_v51 = vadd.f32 %v1308_v28, %v5063_v38  ;;  %v4316_v38 = vld [vmem:[#allocation6 + $0x330] ss:$8 sps:$4 sm:$0xff]  }
 0x579   : > { %v1311_v30 = vpop.f32.mrb[10].mxu1 }
 0x57a   : > { %v4073_v31 = vpop.f32.mrb[11].mxu1 }
 0x57f   : > { %v1348_v32 = vpop.f32.mrb[12].mxu1 }
 0x580   : > { %v1354_v33 = vmul.f32 0.25, %v1348_v32  ;;  %v4078_v34 = vpop.f32.mrb[13].mxu1 }
 0x581   : > { %v1351_v35 = vpop.f32.mrb[14].mxu1  ;;  %v4337_v34 = vld [vmem:[#allocation6 + $0x3a0] ss:$8 sps:$4 sm:$0xff]  }
 0x582   : > { %v4079_v59 = vpop.f32.mrb[15].mxu1  ;;  %v1355_v36 = vadd.f32 %v1354_v33, %v5092_v40  ;;  %v4339_v33 = vld [vmem:[#allocation6 + $0x3a4] ss:$8 sps:$4 sm:$0xff]   ;;  %v4342_v35 = vld [vmem:[#allocation6 + $0x3b4] ss:$8 sps:$4 sm:$0xff]  }
 0x583   : > { %v4340_v59 = vld [vmem:[#allocation6 + $0x3b0] ss:$8 sps:$4 sm:$0xff]  }
 0x584   : > { %v1356_v39 = vsel %vm1254_vm4, %v1355_v36, -inf }
 0x585   : > { %1357 = vmax.xlane.f32.xlu0 %v1356_v39  ;;  %v4343_v39 = vld [vmem:[#allocation6 + $0x3c0] ss:$8 sps:$4 sm:$0xff]  }
 0x612   : > { %v1358_v42 = vpop.xlane.xlu0 %1357 }
 0x613   : > { %v1359_v43 = vsub.f32 %v1355_v36, %v1358_v42  ;;  %v4345_v36 = vld [vmem:[#allocation6 + $0x3c4] ss:$8 sps:$4 sm:$0xff]   ;;  %v4348_v42 = vld [vmem:[#allocation6 + $0x3d4] ss:$8 sps:$4 sm:$0xff]  }
 0x615   : > { %v1360_v44 = vmul.f32 1.442695, %v1359_v43  ;;  %v4346_v43 = vld [vmem:[#allocation6 + $0x3d0] ss:$8 sps:$4 sm:$0xff]  }
 0x617   : > { %4649 = vpow2.f32 %v1360_v44  ;;  %v4349_v44 = vld [vmem:[#allocation6 + $0x3e0] ss:$8 sps:$4 sm:$0xff]  }
 0x621   : > { %v4650_v45 = vpop.eup %4649 }
 0x622   : > { %v1362_v47 = vsel %vm1254_vm4, %v4650_v45, 0.0 }
 0x623   : > { %1363 = vadd.xlane.f32.xlu1 %v1362_v47  ;;  %v4354_v47 = vld [vmem:[#allocation6 + $0x3f4] ss:$8 sps:$4 sm:$0xff]  }
 0x6b0   : > { %v1364_v48 = vpop.xlane.xlu1 %1363 }
 0x6b1   : > { %4651 = vrcp.f32 %v1364_v48  ;;  %v4352_v48 = vld [vmem:[#allocation6 + $0x3f0] ss:$8 sps:$4 sm:$0xff]  }
 0x6bb   : > { %v4652_v49 = vpop.eup %4651 }
 0x6bc   : > { %v1366_v50 = vmul.f32 %v4652_v49, %v4650_v45  ;;  %v4351_v45 = vld [vmem:[#allocation6 + $0x3e4] ss:$8 sps:$4 sm:$0xff]   ;;  %v4355_v49 = vld [vmem:[#allocation6 + $0x400] ss:$8 sps:$4 sm:$0xff]  }
 0x6be   : > { %v1367_v16 = vpack.c.bf16 %v1366_v50, %v1366_v50  ;;  %v4357_v50 = vld [vmem:[#allocation6 + $0x404] ss:$8 sps:$4 sm:$0xff]  }
 0x6bf   : > { %1903 = vmatprep.subr.bf16.mxu0 %v4357_v50 }
 0x6c0   : > { %4083 = vmatmul.mubr.msk.bf16.vlgmr.msra.gmra.mrb[16].mxu1 %vm1254_vm4, %v1367_v16  ;;  %v4360_v16 = vld [vmem:[#allocation6 + $0x414] ss:$8 sps:$4 sm:$0xff]   ;;  %1904 = vmatpush1.bf16.msra.mxu0 %v4355_v49  ;;  %v5163_v49 = vsub.s32 7, %v5035_v23 }
 0x6c1   : > { %1658 = vmatpush1.bf16.msra.mxu1 %v4307_v2  ;;  %1905 = vmatprep.subr.bf16.mxu0 %v4360_v16  ;;  %v4372_v2 = vld [vmem:[#allocation6 + $0x454] ss:$8 sps:$4 sm:$0xff]  }
 0x6c2   : > { %1659 = vmatprep.subr.bf16.mxu1 %v4312_v5  ;;  %v4375_v5 = vld [vmem:[#allocation6 + $0x464] ss:$8 sps:$4 sm:$0xff]   ;;  %v1492_v50 = vrot.slane %v5048_v26, %v5163_v49  ;;  %v1496_v16 = vrot.slane %v5043_v25, %v5163_v49 }
 0x6c5   : > { %1660 = vmatpush1.bf16.msra.mxu1 %v4310_v6  ;;  %v4373_v6 = vld [vmem:[#allocation6 + $0x460] ss:$8 sps:$4 sm:$0xff]  }
 0x6c6   : > { %1661 = vmatprep.subr.bf16.mxu1 %v4315_v7  ;;  %v4378_v7 = vld [vmem:[#allocation6 + $0x474] ss:$8 sps:$4 sm:$0xff]  }
 0x6c9   : > { %1662 = vmatpush1.bf16.msra.mxu1 %v4313_v8  ;;  %v4376_v8 = vld [vmem:[#allocation6 + $0x470] ss:$8 sps:$4 sm:$0xff]  }
 0x6ca   : > { %1663 = vmatprep.subr.bf16.mxu1 %v4318_v9  ;;  %v4381_v9 = vld [vmem:[#allocation6 + $0x484] ss:$8 sps:$4 sm:$0xff]  }
 0x6cd   : > { %1664 = vmatpush1.bf16.msra.mxu1 %v4316_v38  ;;  %v4379_v38 = vld [vmem:[#allocation6 + $0x480] ss:$8 sps:$4 sm:$0xff]  }
 0x793   : > { %v1408_v53 = vpop.f32.mrb[16].mxu1 }
 0x794   : > { %v1415_v54 = vadd.f32 %v1408_v53, %v5061_v37  ;;  %v4084_v58 = vpop.f32.mrb[17].mxu1  ;;  %v4321_v37 = vld [vmem:[#allocation6 + $0x344] ss:$8 sps:$4 sm:$0xff]   ;;  %v4358_v53 = vld [vmem:[#allocation6 + $0x410] ss:$8 sps:$4 sm:$0xff]  }
 0x795   : > { %v1411_v60 = vpop.f32.mrb[18].mxu1  ;;  %1665 = vmatprep.subr.bf16.mxu1 %v4321_v37  ;;  %1906 = vmatpush1.bf16.msra.mxu0 %v4358_v53  ;;  %v4366_v58 = vld [vmem:[#allocation6 + $0x434] ss:$8 sps:$4 sm:$0xff]  }
 0x796   : > { %v4085_v61 = vpop.f32.mrb[19].mxu1  ;;  %v1416_v63 = vadd.f32 %v1415_v54, %v1414_v51  ;;  %1666 = vmatpush1.bf16.msra.mxu1 %v4319_v10  ;;  %v4364_v60 = vld [vmem:[#allocation6 + $0x430] ss:$8 sps:$4 sm:$0xff]   ;;  %v4384_v37 = vld [vmem:[#allocation6 + $0x494] ss:$8 sps:$4 sm:$0xff]  }
 0x797   : > { %1667 = vmatprep.subr.bf16.mxu1 %v4324_v11  ;;  %v4369_v61 = vld [vmem:[#allocation6 + $0x444] ss:$8 sps:$4 sm:$0xff]   ;;  %v4382_v10 = vld [vmem:[#allocation6 + $0x490] ss:$8 sps:$4 sm:$0xff]  }
 0x798   : > { %1417 = vadd.xlane.f32.xlu0 %v1416_v63  ;;  %v4367_v63 = vld [vmem:[#allocation6 + $0x440] ss:$8 sps:$4 sm:$0xff]   ;;  %v4387_v11 = vld [vmem:[#allocation6 + $0x4a4] ss:$8 sps:$4 sm:$0xff]  }
 0x79a   : > { %1668 = vmatpush1.bf16.msra.mxu1 %v4322_v12  ;;  %v4385_v12 = vld [vmem:[#allocation6 + $0x4a0] ss:$8 sps:$4 sm:$0xff]  }
 0x79b   : > { %1669 = vmatprep.subr.bf16.mxu1 %v4327_v13  ;;  %v4390_v13 = vld [vmem:[#allocation6 + $0x4b4] ss:$8 sps:$4 sm:$0xff]  }
 0x79e   : > { %1670 = vmatpush1.bf16.msra.mxu1 %v4325_v14  ;;  %v4388_v14 = vld [vmem:[#allocation6 + $0x4b0] ss:$8 sps:$4 sm:$0xff]  }
 0x79f   : > { %1671 = vmatprep.subr.bf16.mxu1 %v4330_v15  ;;  %v4393_v15 = vld [vmem:[#allocation6 + $0x4c4] ss:$8 sps:$4 sm:$0xff]  }
 0x7a2   : > { %1672 = vmatpush1.bf16.msra.mxu1 %v4328_v17  ;;  %v4391_v17 = vld [vmem:[#allocation6 + $0x4c0] ss:$8 sps:$4 sm:$0xff]  }
 0x7a3   : > { %1673 = vmatprep.subr.bf16.mxu1 %v4333_v18  ;;  %v4396_v18 = vld [vmem:[#allocation6 + $0x4d4] ss:$8 sps:$4 sm:$0xff]  }
 0x7a6   : > { %1674 = vmatpush1.bf16.msra.mxu1 %v4331_v1  ;;  %v4394_v1 = vld [vmem:[#allocation6 + $0x4d0] ss:$8 sps:$4 sm:$0xff]  }
 0x7a7   : > { %1675 = vmatprep.subr.bf16.mxu1 %v4336_v19 }
 0x7aa   : > { %1676 = vmatpush1.bf16.msra.mxu1 %v4334_v20 }
 0x7ab   : > { %1677 = vmatprep.subr.bf16.mxu1 %v4339_v33 }
 0x7ae   : > { %1678 = vmatpush1.bf16.msra.mxu1 %v4337_v34 }
 0x7af   : > { %1679 = vmatprep.subr.bf16.mxu1 %v4342_v35 }
 0x7b2   : > { %1680 = vmatpush1.bf16.msra.mxu1 %v4340_v59 }
 0x7b3   : > { %1681 = vmatprep.subr.bf16.mxu1 %v4345_v36 }
 0x7b6   : > { %1682 = vmatpush1.bf16.msra.mxu1 %v4343_v39 }
 0x7b7   : > { %1683 = vmatprep.subr.bf16.mxu1 %v4348_v42 }
 0x7ba   : > { %1684 = vmatpush1.bf16.msra.mxu1 %v4346_v43 }
 0x7bb   : > { %1685 = vmatprep.subr.bf16.mxu1 %v4351_v45  ;;  %v4402_v45 = vld [vmem:[#allocation6 + $0x4f4] ss:$8 sps:$4 sm:$0xff]  }
 0x7be   : > { %1686 = vmatpush1.bf16.msra.mxu1 %v4349_v44  ;;  %v4397_v44 = vld [vmem:[#allocation6 + $0x4e0] ss:$8 sps:$4 sm:$0xff]  }
 0x7bf   : > { %1687 = vmatprep.subr.bf16.mxu1 %v4354_v47  ;;  %v4400_v47 = vld [vmem:[#allocation6 + $0x4f0] ss:$8 sps:$4 sm:$0xff]  }
 0x7c2   : > { %1688 = vmatpush1.bf16.msra.mxu1 %v4352_v48  ;;  %v4405_v48 = vld [vmem:[#allocation6 + $0x604] ss:$8 sps:$4 sm:$0xff]  }
 0x825   : > { %v1418_v46 = vpop.xlane.xlu0 %1417 }
 0x826   : > { %v1419_v21 = vmul.f32 0.03125, %v1418_v46 }
 0x828   : > { %v1420_v0 = vsub.f32 %v1414_v51, %v1419_v21  ;;  %v1421_v22 = vsub.f32 %v1415_v54, %v1419_v21  ;;  %v4363_v51 = vld [vmem:[#allocation6 + $0x424] ss:$8 sps:$4 sm:$0xff]   ;;  %v4361_v54 = vld [vmem:[#allocation6 + $0x420] ss:$8 sps:$4 sm:$0xff]   ;;  %v5139_v21 = vsub.s32 5, %v5035_v23 }
 0x829   : > { %1907 = vmatprep.subr.bf16.mxu0 %v4363_v51 }
 0x82a   : > { %v5129_v28 = vmul.f32 %v1420_v0, %v5018_v56  ;;  %v5132_v29 = vmul.f32 %v1421_v22, %v5021_v57  ;;  %1908 = vmatpush1.bf16.msra.mxu0 %v4361_v54  ;;  %v5142_v0 = vsub.s32 6, %v5035_v23  ;;  %v1441_v22 = vrot.slane %v5043_v25, %v5139_v21  ;;  %v4406_v23 = vld [vmem:[#allocation6 + $0x610] ss:$8 sps:$4 sm:$0xff]  }
 0x82b   : > { %1909 = vmatprep.subr.bf16.mxu0 %v4366_v58 }
 0x82c   : > { %v1424_v30 = vmul.f32 %v5129_v28, %v5129_v28  ;;  %v1425_v31 = vmul.f32 %v5132_v29, %v5132_v29  ;;  %v1451_v34 = vrot.slane %v5043_v25, %v5142_v0  ;;  %v1447_v35 = vrot.slane %v5048_v26, %v5142_v0  ;;  %v4409_v25 = vld [vmem:[#allocation6 + $0x620] ss:$8 sps:$4 sm:$0xff]  }
 0x82e   : > { %v1426_v32 = vadd.f32 %v1425_v31, %v1424_v30  ;;  %1910 = vmatpush1.bf16.msra.mxu0 %v4364_v60  ;;  %v1437_v30 = vrot.slane %v5048_v26, %v5139_v21  ;;  %v4411_v26 = vld [vmem:[#allocation6 + $0x624] ss:$8 sps:$4 sm:$0xff]  }
 0x82f   : > { %1911 = vmatprep.subr.bf16.mxu0 %v4369_v61 }
 0x830   : > { %1427 = vadd.xlane.f32.xlu1 %v1426_v32 }
 0x832   : > { %1912 = vmatpush1.bf16.msra.mxu0 %v4367_v63 }
 0x833   : > { %1913 = vmatprep.subr.bf16.mxu0 %v4372_v2 }
 0x836   : > { %1914 = vmatpush1.bf16.msra.mxu0 %v4370_v4 }
 0x837   : > { %1915 = vmatprep.subr.bf16.mxu0 %v4375_v5  ;;  %v4403_v5 = vld [vmem:[#allocation6 + $0x600] ss:$8 sps:$4 sm:$0xff]  }
 0x83a   : > { %1916 = vmatpush1.bf16.msra.mxu0 %v4373_v6 }
 0x83b   : > { %1917 = vmatprep.subr.bf16.mxu0 %v4378_v7  ;;  %v4408_v7 = vld [vmem:[#allocation6 + $0x614] ss:$8 sps:$4 sm:$0xff]  }
 0x83e   : > { %1918 = vmatpush1.bf16.msra.mxu0 %v4376_v8  ;;  %v4414_v8 = vld [vmem:[#allocation6 + $0x634] ss:$8 sps:$4 sm:$0xff]  }
 0x83f   : > { %1919 = vmatprep.subr.bf16.mxu0 %v4381_v9  ;;  %v4412_v9 = vld [vmem:[#allocation6 + $0x630] ss:$8 sps:$4 sm:$0xff]  }
 0x842   : > { %1920 = vmatpush1.bf16.msra.mxu0 %v4379_v38  ;;  %v4417_v38 = vld [vmem:[#allocation6 + $0x644] ss:$8 sps:$4 sm:$0xff]  }
 0x843   : > { %1921 = vmatprep.subr.bf16.mxu0 %v4384_v37  ;;  %v4415_v37 = vld [vmem:[#allocation6 + $0x640] ss:$8 sps:$4 sm:$0xff]  }
 0x846   : > { %1922 = vmatpush1.bf16.msra.mxu0 %v4382_v10  ;;  %v4420_v10 = vld [vmem:[#allocation6 + $0x654] ss:$8 sps:$4 sm:$0xff]  }
 0x847   : > { %1923 = vmatprep.subr.bf16.mxu0 %v4387_v11  ;;  %v4418_v11 = vld [vmem:[#allocation6 + $0x650] ss:$8 sps:$4 sm:$0xff]  }
 0x84a   : > { %1924 = vmatpush1.bf16.msra.mxu0 %v4385_v12  ;;  %v4423_v12 = vld [vmem:[#allocation6 + $0x664] ss:$8 sps:$4 sm:$0xff]  }
 0x84b   : > { %1925 = vmatprep.subr.bf16.mxu0 %v4390_v13  ;;  %v4421_v13 = vld [vmem:[#allocation6 + $0x660] ss:$8 sps:$4 sm:$0xff]  }
 0x84e   : > { %1926 = vmatpush1.bf16.msra.mxu0 %v4388_v14  ;;  %v4426_v14 = vld [vmem:[#allocation6 + $0x674] ss:$8 sps:$4 sm:$0xff]  }
 0x84f   : > { %1927 = vmatprep.subr.bf16.mxu0 %v4393_v15  ;;  %v4424_v15 = vld [vmem:[#allocation6 + $0x670] ss:$8 sps:$4 sm:$0xff]  }
 0x852   : > { %1928 = vmatpush1.bf16.msra.mxu0 %v4391_v17  ;;  %v4429_v17 = vld [vmem:[#allocation6 + $0x684] ss:$8 sps:$4 sm:$0xff]  }
 0x853   : > { %1929 = vmatprep.subr.bf16.mxu0 %v4396_v18  ;;  %v4427_v18 = vld [vmem:[#allocation6 + $0x680] ss:$8 sps:$4 sm:$0xff]  }
 0x856   : > { %1930 = vmatpush1.bf16.msra.mxu0 %v4394_v1  ;;  %v4432_v1 = vld [vmem:[#allocation6 + $0x694] ss:$8 sps:$4 sm:$0xff]  }
 0x8bd   : > { %v1428_v19 = vpop.xlane.xlu1 %1427 }
 0x8be   : > { %v1429_v20 = vmul.f32 0.03125, %v1428_v19  ;;  %v4430_v19 = vld [vmem:[#allocation6 + $0x690] ss:$8 sps:$4 sm:$0xff]  }
 0x8c0   : > { %v1430_v46 = vadd.f32 1e-08, %v1429_v20  ;;  %v4435_v20 = vld [vmem:[#allocation6 + $0x6a4] ss:$8 sps:$4 sm:$0xff]  }
 0x8c2   : > { %4653 = vrsqrt.f32 %v1430_v46  ;;  %v4433_v46 = vld [vmem:[#allocation6 + $0x6a0] ss:$8 sps:$4 sm:$0xff]  }
 0x8cc   : > { %v4654_v31 = vpop.eup %4653 }
 0x8cd   : > { %v1432_v32 = vmul.f32 %v4654_v31, %v5129_v28  ;;  %v1433_v33 = vmul.f32 %v4654_v31, %v5132_v29  ;;  %v4399_v29 = vld [vmem:[#allocation6 + $0x4e4] ss:$8 sps:$4 sm:$0xff]  }
 0x8ce   : > { %1931 = vmatprep.subr.bf16.mxu0 %v4399_v29  ;;  %v4441_v31 = vld [vmem:[#allocation6 + $0x6c4] ss:$8 sps:$4 sm:$0xff]   ;;  %v3840_v29 = vld [vmem:[%s5314_s6 + $0x18] ss:$0 sm:$0xff] }
 0x8cf   : > { %v1443_v59 = vmul.f32 %v1441_v22, %v1433_v33  ;;  %v1442_v36 = vmul.f32 %v1437_v30, %v1432_v32  ;;  %1932 = vmatpush1.bf16.msra.mxu0 %v4397_v44  ;;  %v4438_v22 = vld [vmem:[#allocation6 + $0x6b4] ss:$8 sps:$4 sm:$0xff]   ;;  %v4436_v30 = vld [vmem:[#allocation6 + $0x6b0] ss:$8 sps:$4 sm:$0xff]   ;;  %v4439_v32 = vld [vmem:[#allocation6 + $0x6c0] ss:$8 sps:$4 sm:$0xff]  }
 0x8d0   : > { %1933 = vmatprep.subr.bf16.mxu0 %v4402_v45  ;;  %v4444_v33 = vld [vmem:[#allocation6 + $0x6d4] ss:$8 sps:$4 sm:$0xff]  }
 0x8d1   : > { %v5154_v39 = vadd.f32 %v1451_v34, %v1443_v59  ;;  %v5156_v42 = vadd.f32 %v1447_v35, %v1442_v36  ;;  %v4442_v34 = vld [vmem:[#allocation6 + $0x6d0] ss:$8 sps:$4 sm:$0xff]   ;;  %v4447_v35 = vld [vmem:[#allocation6 + $0x6e4] ss:$8 sps:$4 sm:$0xff]   ;;  %v4445_v59 = vld [vmem:[#allocation6 + $0x6e0] ss:$8 sps:$4 sm:$0xff]  }
 0x8d2   : > { %v4450_v36 = vld [vmem:[#allocation6 + $0x6f4] ss:$8 sps:$4 sm:$0xff]  }
 0x8d3   : > { %v1488_v43 = vpack.c.bf16 %v5154_v39, %v5154_v39  ;;  %v1487_v28 = vpack.c.bf16 %v5156_v42, %v5156_v42  ;;  %1934 = vmatpush1.bf16.msra.mxu0 %v4400_v47 }
 0x8d4   : > { %2436 = vmatprep.subr.bf16.mxu0 %v4405_v48 }
 0x8d5   : > { %1689 = vmatprep.mubr.bf16.mxu1 %v1488_v43  ;;  %v4448_v43 = vld [vmem:[#allocation6 + $0x6f0] ss:$8 sps:$4 sm:$0xff]  }
 0x8d6   : > { %1690 = vmatmul.mubr.bf16.vlgmr.msra.gmra.mrb[20].mxu1 %v1487_v28  ;;  %v3839_v28 = vld [vmem:[%s5314_s6 + $0x10] ss:$0 sm:$0xff] }
 0x9a9   : > { %v1691_v53 = vpop.f32.mrb[20].mxu1 }
 0x9aa   : > { %v1692_v51 = vadd.f32 %v1691_v53, %v1492_v50  ;;  %v1693_v54 = vpop.f32.mrb[21].mxu1 }
 0x9ab   : > { %v1694_v58 = vadd.f32 %v1693_v54, %v1496_v16  ;;  %v1695_v60 = vpop.f32.mrb[22].mxu1 }
 0x9ac   : > { %v1698_v61 = vmax.f32 %v1692_v51, 0.0  ;;  %v1696_v63 = vpop.f32.mrb[23].mxu1 }
 0x9ad   : > { %v1699_v2 = vmax.f32 %v1694_v58, 0.0  ;;  %v4453_v63 = vld [vmem:[#allocation6 + $0x504] ss:$8 sps:$4 sm:$0xff]  }
 0x9ae   : > { %v1733_v6 = vpack.c.bf16 %v1698_v61, %v1698_v61  ;;  %v4451_v61 = vld [vmem:[#allocation6 + $0x500] ss:$8 sps:$4 sm:$0xff]   ;;  %2192 = vmatprep.subr.bf16.mxu1 %v4453_v63 }
 0x9af   : > { %v1734_v4 = vpack.c.bf16 %v1699_v2, %v1699_v2  ;;  %v4456_v2 = vld [vmem:[#allocation6 + $0x514] ss:$8 sps:$4 sm:$0xff]   ;;  %2193 = vmatpush1.bf16.msra.mxu1 %v4451_v61 }
 0x9b0   : > { %2194 = vmatprep.subr.bf16.mxu1 %v4456_v2 }
 0x9b1   : > { %1935 = vmatprep.mubr.bf16.mxu0 %v1734_v4  ;;  %v4457_v4 = vld [vmem:[#allocation6 + $0x520] ss:$8 sps:$4 sm:$0xff]  }
 0x9b2   : > { %1936 = vmatmul.mubr.bf16.vlgmr.msra.gmra.mrb[8].mxu0 %v1733_v6  ;;  %v4460_v6 = vld [vmem:[#allocation6 + $0x530] ss:$8 sps:$4 sm:$0xff]  }
 0x9b3   : > { %2437 = vmatpush1.bf16.msra.mxu0 %v4403_v5  ;;  %v4462_v5 = vld [vmem:[#allocation6 + $0x534] ss:$8 sps:$4 sm:$0xff]  }
 0x9b4   : > { %2438 = vmatprep.subr.bf16.mxu0 %v4408_v7  ;;  %v4465_v7 = vld [vmem:[#allocation6 + $0x544] ss:$8 sps:$4 sm:$0xff]  }
 0x9b7   : > { %2439 = vmatpush1.bf16.msra.mxu0 %v4406_v23  ;;  %v4463_v23 = vld [vmem:[#allocation6 + $0x540] ss:$8 sps:$4 sm:$0xff]  }
 0x9b8   : > { %2440 = vmatprep.subr.bf16.mxu0 %v4411_v26  ;;  %v4468_v26 = vld [vmem:[#allocation6 + $0x554] ss:$8 sps:$4 sm:$0xff]  }
 0x9bb   : > { %2441 = vmatpush1.bf16.msra.mxu0 %v4409_v25  ;;  %v4466_v25 = vld [vmem:[#allocation6 + $0x550] ss:$8 sps:$4 sm:$0xff]  }
 0x9bc   : > { %2442 = vmatprep.subr.bf16.mxu0 %v4414_v8  ;;  %v4471_v8 = vld [vmem:[#allocation6 + $0x564] ss:$8 sps:$4 sm:$0xff]  }
 0x9bf   : > { %2443 = vmatpush1.bf16.msra.mxu0 %v4412_v9  ;;  %v4469_v9 = vld [vmem:[#allocation6 + $0x560] ss:$8 sps:$4 sm:$0xff]  }
 0x9c0   : > { %2444 = vmatprep.subr.bf16.mxu0 %v4417_v38  ;;  %v4474_v38 = vld [vmem:[#allocation6 + $0x574] ss:$8 sps:$4 sm:$0xff]  }
 0x9c3   : > { %2445 = vmatpush1.bf16.msra.mxu0 %v4415_v37  ;;  %v4472_v37 = vld [vmem:[#allocation6 + $0x570] ss:$8 sps:$4 sm:$0xff]  }
 0x9c4   : > { %2446 = vmatprep.subr.bf16.mxu0 %v4420_v10  ;;  %v4477_v10 = vld [vmem:[#allocation6 + $0x584] ss:$8 sps:$4 sm:$0xff]  }
 0x9c7   : > { %2447 = vmatpush1.bf16.msra.mxu0 %v4418_v11  ;;  %v4475_v11 = vld [vmem:[#allocation6 + $0x580] ss:$8 sps:$4 sm:$0xff]  }
 0x9c8   : > { %2448 = vmatprep.subr.bf16.mxu0 %v4423_v12  ;;  %v4480_v12 = vld [vmem:[#allocation6 + $0x594] ss:$8 sps:$4 sm:$0xff]  }
 0x9cb   : > { %2449 = vmatpush1.bf16.msra.mxu0 %v4421_v13  ;;  %v4478_v13 = vld [vmem:[#allocation6 + $0x590] ss:$8 sps:$4 sm:$0xff]  }
 0x9cc   : > { %2450 = vmatprep.subr.bf16.mxu0 %v4426_v14  ;;  %v4483_v14 = vld [vmem:[#allocation6 + $0x5a4] ss:$8 sps:$4 sm:$0xff]  }
 0x9cf   : > { %2451 = vmatpush1.bf16.msra.mxu0 %v4424_v15  ;;  %v4481_v15 = vld [vmem:[#allocation6 + $0x5a0] ss:$8 sps:$4 sm:$0xff]  }
 0x9d0   : > { %2452 = vmatprep.subr.bf16.mxu0 %v4429_v17 }
 0x9d3   : > { %2453 = vmatpush1.bf16.msra.mxu0 %v4427_v18 }
 0x9d4   : > { %2454 = vmatprep.subr.bf16.mxu0 %v4432_v1 }
 0x9d7   : > { %2455 = vmatpush1.bf16.msra.mxu0 %v4430_v19 }
 0x9d8   : > { %2456 = vmatprep.subr.bf16.mxu0 %v4435_v20 }
 0x9db   : > { %2457 = vmatpush1.bf16.msra.mxu0 %v4433_v46 }
 0x9dc   : > { %2458 = vmatprep.subr.bf16.mxu0 %v4438_v22 }
 0x9df   : > { %2459 = vmatpush1.bf16.msra.mxu0 %v4436_v30 }
 0x9e0   : > { %2460 = vmatprep.subr.bf16.mxu0 %v4441_v31 }
 0x9e3   : > { %2461 = vmatpush1.bf16.msra.mxu0 %v4439_v32  ;;  %v4486_v32 = vld [vmem:[#allocation6 + $0x5b4] ss:$8 sps:$4 sm:$0xff]  }
 0x9e4   : > { %2462 = vmatprep.subr.bf16.mxu0 %v4444_v33  ;;  %v4484_v33 = vld [vmem:[#allocation6 + $0x5b0] ss:$8 sps:$4 sm:$0xff]  }
 0x9e7   : > { %2463 = vmatpush1.bf16.msra.mxu0 %v4442_v34  ;;  %v4489_v34 = vld [vmem:[#allocation6 + $0x5c4] ss:$8 sps:$4 sm:$0xff]  }
 0x9e8   : > { %2464 = vmatprep.subr.bf16.mxu0 %v4447_v35  ;;  %v4487_v35 = vld [vmem:[#allocation6 + $0x5c0] ss:$8 sps:$4 sm:$0xff]  }
 0x9eb   : > { %2465 = vmatpush1.bf16.msra.mxu0 %v4445_v59  ;;  %v4492_v59 = vld [vmem:[#allocation6 + $0x5d4] ss:$8 sps:$4 sm:$0xff]  }
 0x9ec   : > { %2466 = vmatprep.subr.bf16.mxu0 %v4450_v36  ;;  %v4490_v36 = vld [vmem:[#allocation6 + $0x5d0] ss:$8 sps:$4 sm:$0xff]  }
 0x9ef   : > { %2467 = vmatpush1.bf16.msra.mxu0 %v4448_v43  ;;  %v4495_v43 = vld [vmem:[#allocation6 + $0x5e4] ss:$8 sps:$4 sm:$0xff]  }
 0x9f0   : > { %4086 = vmatprep.subr.bf16.mxu0 %v4810_v55 }
 0xa85   : > { %v1937_v44 = vpop.f32.mrb[8].mxu0 }
 0xa86   : > { %v1938_v45 = vadd.f32 %v3839_v28, %v1937_v44  ;;  %v1939_v47 = vpop.f32.mrb[9].mxu0  ;;  %v4493_v28 = vld [vmem:[#allocation6 + $0x5e0] ss:$8 sps:$4 sm:$0xff]   ;;  %v4496_v44 = vld [vmem:[#allocation6 + $0x5f0] ss:$8 sps:$4 sm:$0xff]  }
 0xa87   : > { %v1940_v48 = vadd.f32 %v3840_v29, %v1939_v47  ;;  %v1941_v50 = vpop.f32.mrb[10].mxu0  ;;  %v4498_v29 = vld [vmem:[#allocation6 + $0x5f4] ss:$8 sps:$4 sm:$0xff]   ;;  %v5191_v47 = vld [vmem:[%s5314_s6 + $0x20] sm:$0xff] }
 0xa88   : > { %v1944_v16 = vadd.f32 %v1938_v45, %v5156_v42  ;;  %v1942_v53 = vpop.f32.mrb[11].mxu0  ;;  %v4454_v42 = vld [vmem:[#allocation6 + $0x510] ss:$8 sps:$4 sm:$0xff]   ;;  %v4501_v45 = vld [vmem:[#allocation6 + $0x704] ss:$8 sps:$4 sm:$0xff]  }
 0xa89   : > { %v1945_v51 = vadd.f32 %v1940_v48, %v5154_v39  ;;  %v4459_v39 = vld [vmem:[#allocation6 + $0x524] ss:$8 sps:$4 sm:$0xff]   ;;  %2195 = vmatpush1.bf16.msra.mxu1 %v4454_v42  ;;  %v2271_v48 = vrot.slane %v5191_v47, %v5070_v41 }
 0xa8a   : > { %v5180_v60 = vpack.c.bf16 %v1944_v16, %v1944_v16  ;;  %2196 = vmatprep.subr.bf16.mxu1 %v4459_v39 }
 0xa8b   : > { %v5178_v54 = vpack.c.bf16 %v1945_v51, %v1945_v51  ;;  %v1951_v58 = vadd.f32 %v1945_v51, %v1944_v16 }
 0xa8d   : > { %2468 = vmatprep.mubr.bf16.mxu0 %v5178_v54  ;;  %1952 = vadd.xlane.f32.xlu0 %v1951_v58  ;;  %v4669_v58 = vld [vmem:[#allocation2] sm:$0xff] }
 0xa8e   : > { %2469 = vmatmul.mubr.bf16.vlgmr.msra.gmra.mrb[12].mxu0 %v5180_v60  ;;  %2197 = vmatpush1.bf16.msra.mxu1 %v4457_v4 }
 0xa8f   : > { %4088 = vmatprep.mubr.msk.bf16.mxu0 %vm4811_vm2, %v4810_v55  ;;  %2198 = vmatprep.subr.bf16.mxu1 %v4462_v5  ;;  %v5201_v5 = vld [vmem:[%s5314_s6 + $0x28] sm:$0xff] }
 0xa92   : > { %2199 = vmatpush1.bf16.msra.mxu1 %v4460_v6  ;;  %v1976_v6 = vrot.slane %v5201_v5, %v5038_v24 }
 0xa93   : > { %2200 = vmatprep.subr.bf16.mxu1 %v4465_v7  ;;  %v1972_v7 = vrot.slane %v5191_v47, %v5038_v24 }
 0xa96   : > { %2201 = vmatpush1.bf16.msra.mxu1 %v4463_v23 }
 0xa97   : > { %2202 = vmatprep.subr.bf16.mxu1 %v4468_v26 }
 0xa9a   : > { %2203 = vmatpush1.bf16.msra.mxu1 %v4466_v25 }
 0xa9b   : > { %2204 = vmatprep.subr.bf16.mxu1 %v4471_v8  ;;  %v1986_v8 = vrot.slane %v5201_v5, %v5051_v27 }
 0xa9e   : > { %2205 = vmatpush1.bf16.msra.mxu1 %v4469_v9  ;;  %v1982_v9 = vrot.slane %v5191_v47, %v5051_v27 }
 0xa9f   : > { %2206 = vmatprep.subr.bf16.mxu1 %v4474_v38 }
 0xaa2   : > { %2207 = vmatpush1.bf16.msra.mxu1 %v4472_v37 }
 0xaa3   : > { %2208 = vmatprep.subr.bf16.mxu1 %v4477_v10 }
 0xaa6   : > { %2209 = vmatpush1.bf16.msra.mxu1 %v4475_v11 }
 0xaa7   : > { %2210 = vmatprep.subr.bf16.mxu1 %v4480_v12 }
 0xaaa   : > { %2211 = vmatpush1.bf16.msra.mxu1 %v4478_v13  ;;  %v4499_v13 = vld [vmem:[#allocation6 + $0x700] ss:$8 sps:$4 sm:$0xff]  }
 0xaab   : > { %2212 = vmatprep.subr.bf16.mxu1 %v4483_v14 }
 0xaae   : > { %2213 = vmatpush1.bf16.msra.mxu1 %v4481_v15  ;;  %v4504_v15 = vld [vmem:[#allocation6 + $0x714] ss:$8 sps:$4 sm:$0xff]  }
 0xaaf   : > { %2214 = vmatprep.subr.bf16.mxu1 %v4486_v32  ;;  %v4519_v32 = vld [vmem:[#allocation6 + $0x764] ss:$8 sps:$4 sm:$0xff]  }
 0xab2   : > { %2215 = vmatpush1.bf16.msra.mxu1 %v4484_v33  ;;  %v4522_v33 = vld [vmem:[#allocation6 + $0x774] ss:$8 sps:$4 sm:$0xff]  }
 0xab3   : > { %2216 = vmatprep.subr.bf16.mxu1 %v4489_v34  ;;  %v4520_v34 = vld [vmem:[#allocation6 + $0x770] ss:$8 sps:$4 sm:$0xff]  }
 0xab6   : > { %2217 = vmatpush1.bf16.msra.mxu1 %v4487_v35  ;;  %v4525_v35 = vld [vmem:[#allocation6 + $0x784] ss:$8 sps:$4 sm:$0xff]  }
 0xab7   : > { %2218 = vmatprep.subr.bf16.mxu1 %v4492_v59  ;;  %v4523_v59 = vld [vmem:[#allocation6 + $0x780] ss:$8 sps:$4 sm:$0xff]  }
 0xaba   : > { %2219 = vmatpush1.bf16.msra.mxu1 %v4490_v36  ;;  %v4528_v36 = vld [vmem:[#allocation6 + $0x794] ss:$8 sps:$4 sm:$0xff]  }
 0xabb   : > { %2220 = vmatprep.subr.bf16.mxu1 %v4495_v43  ;;  %v4526_v43 = vld [vmem:[#allocation6 + $0x790] ss:$8 sps:$4 sm:$0xff]  }
 0xabe   : > { %2221 = vmatpush1.bf16.msra.mxu1 %v4493_v28  ;;  %v4531_v28 = vld [vmem:[#allocation6 + $0x7a4] ss:$8 sps:$4 sm:$0xff]  }
 0xabf   : > { %2222 = vmatprep.subr.bf16.mxu1 %v4498_v29  ;;  %v4529_v29 = vld [vmem:[#allocation6 + $0x7a0] ss:$8 sps:$4 sm:$0xff]  }
 0xac2   : > { %2223 = vmatpush1.bf16.msra.mxu1 %v4496_v44  ;;  %v4534_v44 = vld [vmem:[#allocation6 + $0x7b4] ss:$8 sps:$4 sm:$0xff]  }
 0xac3   : > { %2678 = vmatprep.subr.bf16.mxu1 %v4501_v45  ;;  %v4532_v45 = vld [vmem:[#allocation6 + $0x7b0] ss:$8 sps:$4 sm:$0xff]  }
 0xb1a   : > { %v1953_v17 = vpop.xlane.xlu0 %1952 }
 0xb1b   : > { %v1954_v18 = vmul.f32 0.03125, %v1953_v17  ;;  %v4502_v17 = vld [vmem:[#allocation6 + $0x710] ss:$8 sps:$4 sm:$0xff]  }
 0xb1d   : > { %v1955_v1 = vsub.f32 %v1944_v16, %v1954_v18  ;;  %v1956_v19 = vsub.f32 %v1945_v51, %v1954_v18  ;;  %v4507_v18 = vld [vmem:[#allocation6 + $0x724] ss:$8 sps:$4 sm:$0xff]  }
 0xb1f   : > { %v1957_v20 = vmul.f32 %v1955_v1, %v5018_v56  ;;  %v1958_v46 = vmul.f32 %v1956_v19, %v5021_v57  ;;  %v4505_v1 = vld [vmem:[#allocation6 + $0x720] ss:$8 sps:$4 sm:$0xff]   ;;  %v4510_v19 = vld [vmem:[#allocation6 + $0x734] ss:$8 sps:$4 sm:$0xff]  }
 0xb21   : > { %v1959_v22 = vmul.f32 %v1957_v20, %v1957_v20  ;;  %v1960_v30 = vmul.f32 %v1958_v46, %v1958_v46 }
 0xb23   : > { %v1961_v31 = vadd.f32 %v1960_v30, %v1959_v22  ;;  %v4511_v22 = vld [vmem:[#allocation6 + $0x740] ss:$8 sps:$4 sm:$0xff]   ;;  %v4516_v30 = vld [vmem:[#allocation6 + $0x754] ss:$8 sps:$4 sm:$0xff]  }
 0xb25   : > { %1962 = vadd.xlane.f32.xlu1 %v1961_v31  ;;  %v4514_v31 = vld [vmem:[#allocation6 + $0x750] ss:$8 sps:$4 sm:$0xff]  }
 0xb61   : > { %v2470_v50 = vpop.f32.mrb[12].mxu0 }
 0xb62   : > { %v2471_v16 = vadd.f32 %v2470_v50, %v2271_v48  ;;  %v5195_v53 = vpop.f32.mrb[13].mxu0  ;;  %v4537_v48 = vld [vmem:[#allocation6 + $0x7c4] ss:$8 sps:$4 sm:$0xff]   ;;  %v4535_v50 = vld [vmem:[#allocation6 + $0x7c0] ss:$8 sps:$4 sm:$0xff]  }
 0xb63   : > { %v2474_v51 = vpop.f32.mrb[14].mxu0 }
 0xb64   : > { %v2721_v61 = vadd.f32 %v4669_v58, %v2471_v16  ;;  %v2475_v63 = vpop.f32.mrb[15].mxu0  ;;  %v4540_v16 = vld [vmem:[#allocation6 + $0x7d4] ss:$8 sps:$4 sm:$0xff]   ;;  %v4538_v51 = vld [vmem:[#allocation6 + $0x7d0] ss:$8 sps:$4 sm:$0xff]  }
 0xb65   : > { %v4543_v58 = vld [vmem:[#allocation6 + $0x7e4] ss:$8 sps:$4 sm:$0xff]   ;;  %v4546_v63 = vld [vmem:[#allocation6 + $0x7f4] ss:$8 sps:$4 sm:$0xff]  }
 0xb66   : > { %v2723_v2 = vpack.c.bf16 %v2721_v61, %v2721_v61  ;;  %v4541_v61 = vld [vmem:[#allocation6 + $0x7e0] ss:$8 sps:$4 sm:$0xff]  }
 0xb68   : > { %4087 = vmatpush3.bf16.xpose.msra.mxu0 %v2723_v2  ;;  %v4544_v2 = vld [vmem:[#allocation6 + $0x7f0] ss:$8 sps:$4 sm:$0xff]  }
 0xb69   : > { %4092 = vmatprep.subr.bf16.mxu0 %v4810_v55 }
 0xbb2   : > { %v1963_v42 = vpop.xlane.xlu1 %1962 }
 0xbb3   : > { %v1964_v39 = vmul.f32 0.03125, %v1963_v42  ;;  %v2027_v42 = vrot.slane %v5191_v47, %v5080_v52 }
 0xbb5   : > { %v1965_v4 = vadd.f32 1e-08, %v1964_v39 }
 0xbb7   : > { %4655 = vrsqrt.f32 %v1965_v4 }
 0xbc1   : > { %v4656_v23 = vpop.eup %4655 }
 0xbc2   : > { %v1967_v26 = vmul.f32 %v4656_v23, %v1957_v20  ;;  %v1968_v25 = vmul.f32 %v4656_v23, %v1958_v46  ;;  %v4508_v20 = vld [vmem:[#allocation6 + $0x730] ss:$8 sps:$4 sm:$0xff]   ;;  %v4513_v46 = vld [vmem:[#allocation6 + $0x744] ss:$8 sps:$4 sm:$0xff]  }
 0xbc4   : > { %v1978_v38 = vmul.f32 %v1976_v6, %v1968_v25  ;;  %v1977_v37 = vmul.f32 %v1972_v7, %v1967_v26  ;;  %v2513_v25 = vrot.slane %v5191_v47, %v5098_v62 }
 0xbc6   : > { %v5211_v10 = vadd.f32 %v1986_v8, %v1978_v38  ;;  %v5213_v11 = vadd.f32 %v1982_v9, %v1977_v37 }
 0xbc8   : > { %v2023_v12 = vpack.c.bf16 %v5211_v10, %v5211_v10  ;;  %v2022_v14 = vpack.c.bf16 %v5213_v11, %v5213_v11 }
 0xbca   : > { %2224 = vmatprep.mubr.bf16.mxu1 %v2023_v12 }
 0xbcb   : > { %2225 = vmatmul.mubr.bf16.vlgmr.msra.gmra.mrb[24].mxu1 %v2022_v14 }
 0xbcc   : > { %2679 = vmatpush1.bf16.msra.mxu1 %v4499_v13  ;;  %2710 = vmatprep.mubr.bf16.mxu1 %v5178_v54  ;;  %v4517_v54 = vld [vmem:[#allocation6 + $0x760] ss:$8 sps:$4 sm:$0xff]  }
 0xbcd   : > { %2680 = vmatprep.subr.bf16.mxu1 %v4504_v15 }
 0xbd0   : > { %2681 = vmatpush1.bf16.msra.mxu1 %v4502_v17 }
 0xbd1   : > { %2682 = vmatprep.subr.bf16.mxu1 %v4507_v18 }
 0xbd4   : > { %2683 = vmatpush1.bf16.msra.mxu1 %v4505_v1 }
 0xbd5   : > { %2684 = vmatprep.subr.bf16.mxu1 %v4510_v19 }
 0xbd8   : > { %2685 = vmatpush1.bf16.msra.mxu1 %v4508_v20 }
 0xbd9   : > { %2686 = vmatprep.subr.bf16.mxu1 %v4513_v46 }
 0xbdc   : > { %2687 = vmatpush1.bf16.msra.mxu1 %v4511_v22 }
 0xbdd   : > { %2688 = vmatprep.subr.bf16.mxu1 %v4516_v30 }
 0xbe0   : > { %2689 = vmatpush1.bf16.msra.mxu1 %v4514_v31 }
 0xbe1   : > { %2690 = vmatprep.subr.bf16.mxu1 %v4519_v32 }
 0xbe4   : > { %2691 = vmatpush1.bf16.msra.mxu1 %v4517_v54 }
 0xbe5   : > { %2692 = vmatprep.subr.bf16.mxu1 %v4522_v33  ;;  %v2275_v33 = vrot.slane %v5201_v5, %v5070_v41 }
 0xbe8   : > { %2693 = vmatpush1.bf16.msra.mxu1 %v4520_v34  ;;  %v2473_v34 = vadd.f32 %v5195_v53, %v2275_v33  ;;  %v4559_v33 = vld [vmem:[#allocation6 + $0x840] ss:$8 sps:$4 sm:$0xff]  }
 0xbe9   : > { %2694 = vmatprep.subr.bf16.mxu1 %v4525_v35  ;;  %v2517_v35 = vrot.slane %v5201_v5, %v5098_v62 }
 0xbec   : > { %2695 = vmatpush1.bf16.msra.mxu1 %v4523_v59 }
 0xbed   : > { %2696 = vmatprep.subr.bf16.mxu1 %v4528_v36  ;;  %v4670_v36 = vld [vmem:[#allocation2 + $0x8] sm:$0xff] }
 0xbf0   : > { %2697 = vmatpush1.bf16.msra.mxu1 %v4526_v43  ;;  %v2722_v43 = vadd.f32 %v4670_v36, %v2473_v34  ;;  %v4564_v34 = vld [vmem:[#allocation6 + $0x854] ss:$8 sps:$4 sm:$0xff]   ;;  %v4565_v36 = vld [vmem:[#allocation6 + $0x860] ss:$8 sps:$4 sm:$0xff]  }
 0xbf1   : > { %2698 = vmatprep.subr.bf16.mxu1 %v4531_v28 }
 0xbf4   : > { %2699 = vmatpush1.bf16.msra.mxu1 %v4529_v29 }
 0xbf5   : > { %2700 = vmatprep.subr.bf16.mxu1 %v4534_v44  ;;  %v2031_v44 = vrot.slane %v5201_v5, %v5080_v52 }
 0xbf8   : > { %2701 = vmatpush1.bf16.msra.mxu1 %v4532_v45 }
 0xbf9   : > { %2702 = vmatprep.subr.bf16.mxu1 %v4537_v48  ;;  %v2724_v48 = vpack.c.bf16 %v2722_v43, %v2722_v43  ;;  %v4570_v43 = vld [vmem:[#allocation6 + $0x874] ss:$8 sps:$4 sm:$0xff]  }
 0xbfc   : > { %2703 = vmatpush1.bf16.msra.mxu1 %v4535_v50  ;;  %v4671_v50 = vld [vmem:[#allocation4 + $0x8] sm:$0xff] }
 0xbfd   : > { %2704 = vmatprep.subr.bf16.mxu1 %v4540_v16 }
 0xc00   : > { %2705 = vmatpush1.bf16.msra.mxu1 %v4538_v51 }
 0xc01   : > { %2706 = vmatprep.subr.bf16.mxu1 %v4543_v58 }
 0xc04   : > { %2707 = vmatpush1.bf16.msra.mxu1 %v4541_v61 }
 0xc05   : > { %2708 = vmatprep.subr.bf16.mxu1 %v4546_v63 }
 0xc08   : > { %2709 = vmatpush1.bf16.msra.mxu1 %v4544_v2 }
 0xc0b   : > { %2711 = vmatmul.mubr.bf16.vlgmr.msra.gmra.mrb[28].mxu1 %v5180_v60 }
 0xc9e   : > { %v2226_v39 = vpop.f32.mrb[24].mxu1 }
 0xc9f   : > { %v2227_v4 = vadd.f32 %v2226_v39, %v2027_v42  ;;  %v2228_v6 = vpop.f32.mrb[25].mxu1 }
 0xca0   : > { %v2230_v7 = vpop.f32.mrb[26].mxu1  ;;  %v2229_v53 = vadd.f32 %v2228_v6, %v2031_v44  ;;  %v4571_v44 = vld [vmem:[#allocation6 + $0x880] ss:$8 sps:$4 sm:$0xff]  }
 0xca1   : > { %v2719_v23 = vpack.c.bf16 %v2227_v4, %v2227_v4  ;;  %v2231_v26 = vpop.f32.mrb[27].mxu1 }
 0xca2   : > { %v2720_v51 = vpack.c.bf16 %v2229_v53, %v2229_v53 }
 0xca3   : > { %4089 = vmatmul.mubr.bf16.vlgmr.msra.gmra.mrb[16].mxu0 %v2719_v23 }
 0xca4   : > { %4094 = vmatprep.mubr.msk.bf16.mxu0 %vm4811_vm2, %v4810_v55 }
 0xcde   : > { %v2712_v8 = vpop.f32.mrb[28].mxu1 }
 0xcdf   : > { %v2713_v9 = vadd.f32 %v2712_v8, %v2513_v25  ;;  %v2714_v38 = vpop.f32.mrb[29].mxu1 }
 0xce0   : > { %v2716_v60 = vpop.f32.mrb[30].mxu1  ;;  %v2715_v28 = vadd.f32 %v2714_v38, %v2517_v35  ;;  %v4562_v35 = vld [vmem:[#allocation6 + $0x850] ss:$8 sps:$4 sm:$0xff]  }
 0xce1   : > { %v2725_v37 = vadd.f32 %v2713_v9, %v5102_v3  ;;  %v2717_v12 = vpop.f32.mrb[31].mxu1 }
 0xce2   : > { %v2726_v16 = vadd.f32 %v4671_v50, %v2715_v28  ;;  %v4568_v28 = vld [vmem:[#allocation6 + $0x870] ss:$8 sps:$4 sm:$0xff]  }
 0xce3   : > { %v2727_v13 = vpack.c.bf16 %v2725_v37, %v2725_v37 }
 0xce4   : > { %v2728_v62 = vpack.c.bf16 %v2726_v16, %v2726_v16 }
 0xce5   : > { %v2787_v14 = vsel %vm1270_vm5, %v2727_v13, 0 }
 0xce6   : > { %4093 = vmatpush3.bf16.msra.mxu0 %v2787_v14  ;;  %v2887_v58 = vsel %vm1270_vm5, %v2728_v62, 0 }
 0xce7   : > { %4098 = vmatprep.subr.bf16.mxu0 %v4810_v55 }
 0xd76   : > { %v2763_v15 = vpop.f32.mrb[16].mxu0 }
 0xd77   : > { %v2769_v17 = vmul.f32 0.25, %v2763_v15  ;;  %v4090_v18 = vpop.f32.mrb[17].mxu0 }
 0xd78   : > { %v2766_v1 = vpop.f32.mrb[18].mxu0 }
 0xd79   : > { %v4091_v19 = vpop.f32.mrb[19].mxu0  ;;  %v2770_v20 = vadd.f32 %v2769_v17, %v5092_v40 }
 0xd7b   : > { %v2771_v46 = vsel %vm1254_vm4, %v2770_v20, -inf }
 0xd7c   : > { %2772 = vmax.xlane.f32.xlu0 %v2771_v46  ;;  %v4547_v46 = vld [vmem:[#allocation6 + $0x800] ss:$8 sps:$4 sm:$0xff]  }
 0xe09   : > { %v2773_v22 = vpop.xlane.xlu0 %2772 }
 0xe0a   : > { %v2774_v30 = vsub.f32 %v2770_v20, %v2773_v22  ;;  %v4549_v22 = vld [vmem:[#allocation6 + $0x804] ss:$8 sps:$4 sm:$0xff]  }
 0xe0c   : > { %v2775_v3 = vmul.f32 1.442695, %v2774_v30  ;;  %v4552_v30 = vld [vmem:[#allocation6 + $0x814] ss:$8 sps:$4 sm:$0xff]  }
 0xe0e   : > { %4657 = vpow2.f32 %v2775_v3  ;;  %v4550_v3 = vld [vmem:[#allocation6 + $0x810] ss:$8 sps:$4 sm:$0xff]  }
 0xe18   : > { %v4658_v31 = vpop.eup %4657 }
 0xe19   : > { %v2777_v32 = vsel %vm1254_vm4, %v4658_v31, 0.0 }
 0xe1a   : > { %2778 = vadd.xlane.f32.xlu1 %v2777_v32  ;;  %v4553_v32 = vld [vmem:[#allocation6 + $0x820] ss:$8 sps:$4 sm:$0xff]  }
 0xea7   : > { %v2779_v54 = vpop.xlane.xlu1 %2778 }
 0xea8   : > { %4659 = vrcp.f32 %v2779_v54  ;;  %v4558_v54 = vld [vmem:[#allocation6 + $0x834] ss:$8 sps:$4 sm:$0xff]  }
 0xeb2   : > { %v4660_v59 = vpop.eup %4659 }
 0xeb3   : > { %v2781_v29 = vmul.f32 %v4660_v59, %v4658_v31  ;;  %v4555_v31 = vld [vmem:[#allocation6 + $0x824] ss:$8 sps:$4 sm:$0xff]  }
 0xeb4   : > { %v4567_v59 = vld [vmem:[#allocation6 + $0x864] ss:$8 sps:$4 sm:$0xff]  }
 0xeb5   : > { %v2782_v45 = vpack.c.bf16 %v2781_v29, %v2781_v29  ;;  %v4573_v29 = vld [vmem:[#allocation6 + $0x884] ss:$8 sps:$4 sm:$0xff]  }
 0xeb7   : > { %4095 = vmatmul.mubr.msk.bf16.vlgmr.msra.gmra.mrb[20].mxu0 %vm1254_vm4, %v2782_v45  ;;  %v4576_v45 = vld [vmem:[#allocation6 + $0x894] ss:$8 sps:$4 sm:$0xff]  }
 0xeb8   : > { %4099 = vmatpush3.bf16.xpose.msra.mxu0 %v2724_v48  ;;  %4100 = vmatprep.mubr.msk.bf16.mxu0 %vm4811_vm2, %v4810_v55  ;;  %v4574_v48 = vld [vmem:[#allocation6 + $0x890] ss:$8 sps:$4 sm:$0xff]  }
 0xeb9   : > { %4104 = vmatprep.subr.bf16.mxu0 %v4810_v55 }
 0xebf   : > { %4101 = vmatmul.mubr.bf16.vlgmr.msra.gmra.mrb[24].mxu0 %v2720_v51 }
 0xec0   : > { %4105 = vmatpush3.bf16.msra.mxu0 %v2887_v58  ;;  %4106 = vmatprep.mubr.msk.bf16.mxu0 %vm4811_vm2, %v4810_v55 }
 0xec1   : > { %3172 = vmatprep.subr.bf16.mxu0 %v4549_v22  ;;  %v4613_v22 = vld [vmem:[#allocation6 + $0x960] ss:$8 sps:$4 sm:$0xff]  }
 0xf8a   : > { %v2823_v61 = vpop.f32.mrb[20].mxu0 }
 0xf8b   : > { %v4096_v63 = vpop.f32.mrb[21].mxu0 }
 0xf8c   : > { %v2826_v2 = vpop.f32.mrb[22].mxu0 }
 0xf8d   : > { %v4097_v42 = vpop.f32.mrb[23].mxu0 }
 0xf8e   : > { %v4579_v42 = vld [vmem:[#allocation6 + $0x8a4] ss:$8 sps:$4 sm:$0xff]  }
 0xf92   : > { %v2863_v39 = vpop.f32.mrb[24].mxu0 }
 0xf93   : > { %v2869_v4 = vmul.f32 0.25, %v2863_v39  ;;  %v4102_v7 = vpop.f32.mrb[25].mxu0  ;;  %v4577_v39 = vld [vmem:[#allocation6 + $0x8a0] ss:$8 sps:$4 sm:$0xff]  }
 0xf94   : > { %v2866_v23 = vpop.f32.mrb[26].mxu0  ;;  %v4580_v7 = vld [vmem:[#allocation6 + $0x8b0] ss:$8 sps:$4 sm:$0xff]  }
 0xf95   : > { %v4103_v6 = vpop.f32.mrb[27].mxu0  ;;  %v2870_v26 = vadd.f32 %v2869_v4, %v5092_v40  ;;  %v2929_v40 = vadd.f32 %v2823_v61, %v5213_v11  ;;  %v4556_v11 = vld [vmem:[#allocation6 + $0x830] ss:$8 sps:$4 sm:$0xff]   ;;  %v4582_v4 = vld [vmem:[#allocation6 + $0x8b4] ss:$8 sps:$4 sm:$0xff]  }
 0xf96   : > { %v4585_v23 = vld [vmem:[#allocation6 + $0x8c4] ss:$8 sps:$4 sm:$0xff]   ;;  %v4583_v6 = vld [vmem:[#allocation6 + $0x8c0] ss:$8 sps:$4 sm:$0xff]  }
 0xf97   : > { %v2871_v25 = vsel %vm1254_vm4, %v2870_v26, -inf }
 0xf98   : > { %2872 = vmax.xlane.f32.xlu0 %v2871_v25  ;;  %v4586_v25 = vld [vmem:[#allocation6 + $0x8d0] ss:$8 sps:$4 sm:$0xff]  }
0x1025   : > { %v2873_v8 = vpop.xlane.xlu0 %2872 }
0x1026   : > { %v2874_v9 = vsub.f32 %v2870_v26, %v2873_v8  ;;  %v4588_v26 = vld [vmem:[#allocation6 + $0x8d4] ss:$8 sps:$4 sm:$0xff]   ;;  %v4589_v8 = vld [vmem:[#allocation6 + $0x8e0] ss:$8 sps:$4 sm:$0xff]  }
0x1028   : > { %v2875_v38 = vmul.f32 1.442695, %v2874_v9  ;;  %v4591_v9 = vld [vmem:[#allocation6 + $0x8e4] ss:$8 sps:$4 sm:$0xff]  }
0x102a   : > { %4661 = vpow2.f32 %v2875_v38  ;;  %v4594_v38 = vld [vmem:[#allocation6 + $0x8f4] ss:$8 sps:$4 sm:$0xff]  }
0x1034   : > { %v4662_v60 = vpop.eup %4661 }
0x1035   : > { %v2877_v55 = vsel %vm1254_vm4, %v4662_v60, 0.0 }
0x1036   : > { %2878 = vadd.xlane.f32.xlu1 %v2877_v55  ;;  %v4595_v55 = vld [vmem:[#allocation6 + $0x900] ss:$8 sps:$4 sm:$0xff]  }
0x10c3   : > { %v2879_v37 = vpop.xlane.xlu1 %2878 }
0x10c4   : > { %4663 = vrcp.f32 %v2879_v37  ;;  %v4597_v37 = vld [vmem:[#allocation6 + $0x904] ss:$8 sps:$4 sm:$0xff]  }
0x10c5   : > { %3418 = vmatprep.subr.bf16.mxu1 %v4597_v37 }
0x10c6   : > { %3419 = vmatpush1.bf16.msra.mxu1 %v4595_v55 }
0x10ce   : > { %v4664_v12 = vpop.eup %4663 }
0x10cf   : > { %v2881_v13 = vmul.f32 %v4664_v12, %v4662_v60  ;;  %v4592_v60 = vld [vmem:[#allocation6 + $0x8f0] ss:$8 sps:$4 sm:$0xff]   ;;  %v4600_v12 = vld [vmem:[#allocation6 + $0x914] ss:$8 sps:$4 sm:$0xff]  }
0x10d0   : > { %3420 = vmatprep.subr.bf16.mxu1 %v4600_v12 }
0x10d1   : > { %v2882_v14 = vpack.c.bf16 %v2881_v13, %v2881_v13  ;;  %v4598_v13 = vld [vmem:[#allocation6 + $0x910] ss:$8 sps:$4 sm:$0xff]  }
0x10d2   : > { %3421 = vmatpush1.bf16.msra.mxu1 %v4598_v13 }
0x10d3   : > { %4107 = vmatmul.mubr.msk.bf16.vlgmr.msra.gmra.mrb[28].mxu0 %vm1254_vm4, %v2882_v14  ;;  %v4603_v14 = vld [vmem:[#allocation6 + $0x924] ss:$8 sps:$4 sm:$0xff]  }
0x10d4   : > { %3173 = vmatpush1.bf16.msra.mxu0 %v4547_v46  ;;  %3422 = vmatprep.subr.bf16.mxu1 %v4603_v14  ;;  %v4615_v46 = vld [vmem:[#allocation6 + $0x964] ss:$8 sps:$4 sm:$0xff]  }
0x10d5   : > { %3174 = vmatprep.subr.bf16.mxu0 %v4552_v30  ;;  %v4618_v30 = vld [vmem:[#allocation6 + $0x974] ss:$8 sps:$4 sm:$0xff]  }
0x10d8   : > { %3175 = vmatpush1.bf16.msra.mxu0 %v4550_v3  ;;  %v4616_v3 = vld [vmem:[#allocation6 + $0x970] ss:$8 sps:$4 sm:$0xff]  }
0x10d9   : > { %3176 = vmatprep.subr.bf16.mxu0 %v4555_v31  ;;  %v4621_v31 = vld [vmem:[#allocation6 + $0x984] ss:$8 sps:$4 sm:$0xff]  }
0x10dc   : > { %3177 = vmatpush1.bf16.msra.mxu0 %v4553_v32  ;;  %v4619_v32 = vld [vmem:[#allocation6 + $0x980] ss:$8 sps:$4 sm:$0xff]  }
0x10dd   : > { %3178 = vmatprep.subr.bf16.mxu0 %v4558_v54  ;;  %v4624_v54 = vld [vmem:[#allocation6 + $0x994] ss:$8 sps:$4 sm:$0xff]  }
0x10e0   : > { %3179 = vmatpush1.bf16.msra.mxu0 %v4556_v11  ;;  %v4622_v11 = vld [vmem:[#allocation6 + $0x990] ss:$8 sps:$4 sm:$0xff]  }
0x11a6   : > { %v2923_v15 = vpop.f32.mrb[28].mxu0 }
0x11a7   : > { %v2930_v17 = vadd.f32 %v2923_v15, %v5211_v10  ;;  %v4108_v18 = vpop.f32.mrb[29].mxu0  ;;  %v4561_v10 = vld [vmem:[#allocation6 + $0x844] ss:$8 sps:$4 sm:$0xff]   ;;  %v4601_v15 = vld [vmem:[#allocation6 + $0x920] ss:$8 sps:$4 sm:$0xff]  }
0x11a8   : > { %v2926_v1 = vpop.f32.mrb[30].mxu0  ;;  %3180 = vmatprep.subr.bf16.mxu0 %v4561_v10  ;;  %3423 = vmatpush1.bf16.msra.mxu1 %v4601_v15  ;;  %v4609_v18 = vld [vmem:[#allocation6 + $0x944] ss:$8 sps:$4 sm:$0xff]   ;;  %v4007_v15 = vld [vmem:[%s5314_s6 + $0x30] ss:$0 sm:$0xff] }
0x11a9   : > { %v4109_v19 = vpop.f32.mrb[31].mxu0  ;;  %v2931_v20 = vadd.f32 %v2930_v17, %v2929_v40  ;;  %3181 = vmatpush1.bf16.msra.mxu0 %v4559_v33  ;;  %v4607_v1 = vld [vmem:[#allocation6 + $0x940] ss:$8 sps:$4 sm:$0xff]   ;;  %v4627_v10 = vld [vmem:[#allocation6 + $0x9a4] ss:$8 sps:$4 sm:$0xff]  }
0x11aa   : > { %3182 = vmatprep.subr.bf16.mxu0 %v4564_v34  ;;  %v4612_v19 = vld [vmem:[#allocation6 + $0x954] ss:$8 sps:$4 sm:$0xff]   ;;  %v4625_v33 = vld [vmem:[#allocation6 + $0x9a0] ss:$8 sps:$4 sm:$0xff]  }
0x11ab   : > { %2932 = vadd.xlane.f32.xlu0 %v2931_v20  ;;  %v4610_v20 = vld [vmem:[#allocation6 + $0x950] ss:$8 sps:$4 sm:$0xff]   ;;  %v4630_v34 = vld [vmem:[#allocation6 + $0x9b4] ss:$8 sps:$4 sm:$0xff]  }
0x11ad   : > { %3183 = vmatpush1.bf16.msra.mxu0 %v4562_v35  ;;  %v4628_v35 = vld [vmem:[#allocation6 + $0x9b0] ss:$8 sps:$4 sm:$0xff]  }
0x11ae   : > { %3184 = vmatprep.subr.bf16.mxu0 %v4567_v59  ;;  %v4633_v59 = vld [vmem:[#allocation6 + $0x9c4] ss:$8 sps:$4 sm:$0xff]  }
0x11b1   : > { %3185 = vmatpush1.bf16.msra.mxu0 %v4565_v36  ;;  %v4631_v36 = vld [vmem:[#allocation6 + $0x9c0] ss:$8 sps:$4 sm:$0xff]  }
0x11b2   : > { %3186 = vmatprep.subr.bf16.mxu0 %v4570_v43  ;;  %v4636_v43 = vld [vmem:[#allocation6 + $0x9d4] ss:$8 sps:$4 sm:$0xff]  }
0x11b5   : > { %3187 = vmatpush1.bf16.msra.mxu0 %v4568_v28  ;;  %v4634_v28 = vld [vmem:[#allocation6 + $0x9d0] ss:$8 sps:$4 sm:$0xff]  }
0x11b6   : > { %3188 = vmatprep.subr.bf16.mxu0 %v4573_v29 }
0x11b9   : > { %3189 = vmatpush1.bf16.msra.mxu0 %v4571_v44 }
0x11ba   : > { %3190 = vmatprep.subr.bf16.mxu0 %v4576_v45 }
0x11bd   : > { %3191 = vmatpush1.bf16.msra.mxu0 %v4574_v48  ;;  %v2956_v48 = vrot.slane %v5201_v5, %v5139_v21 }
0x11be   : > { %3192 = vmatprep.subr.bf16.mxu0 %v4579_v42 }
0x11c1   : > { %3193 = vmatpush1.bf16.msra.mxu0 %v4577_v39 }
0x11c2   : > { %3194 = vmatprep.subr.bf16.mxu0 %v4582_v4 }
0x11c5   : > { %3195 = vmatpush1.bf16.msra.mxu0 %v4580_v7 }
0x11c6   : > { %3196 = vmatprep.subr.bf16.mxu0 %v4585_v23 }
0x11c9   : > { %3197 = vmatpush1.bf16.msra.mxu0 %v4583_v6  ;;  %v4637_v6 = vld [vmem:[#allocation6 + $0x9e0] ss:$8 sps:$4 sm:$0xff]  }
0x11ca   : > { %3198 = vmatprep.subr.bf16.mxu0 %v4588_v26  ;;  %v3007_v26 = vrot.slane %v5191_v47, %v5163_v49 }
0x11cd   : > { %3199 = vmatpush1.bf16.msra.mxu0 %v4586_v25 }
0x11ce   : > { %3200 = vmatprep.subr.bf16.mxu0 %v4591_v9 }
0x11d1   : > { %3201 = vmatpush1.bf16.msra.mxu0 %v4589_v8 }
0x11d2   : > { %3202 = vmatprep.subr.bf16.mxu0 %v4594_v38 }
0x11d5   : > { %3203 = vmatpush1.bf16.msra.mxu0 %v4592_v60 }
0x1238   : > { %v2933_v50 = vpop.xlane.xlu0 %2932 }
0x1239   : > { %v2934_v16 = vmul.f32 0.03125, %v2933_v50  ;;  %v2952_v50 = vrot.slane %v5191_v47, %v5139_v21  ;;  %v4639_v21 = vld [vmem:[#allocation6 + $0x9e4] ss:$8 sps:$4 sm:$0xff]  }
0x123b   : > { %v2935_v53 = vsub.f32 %v2929_v40, %v2934_v16  ;;  %v2936_v62 = vsub.f32 %v2930_v17, %v2934_v16  ;;  %v4606_v40 = vld [vmem:[#allocation6 + $0x934] ss:$8 sps:$4 sm:$0xff]   ;;  %v4604_v17 = vld [vmem:[#allocation6 + $0x930] ss:$8 sps:$4 sm:$0xff]  }
0x123c   : > { %3424 = vmatprep.subr.bf16.mxu1 %v4606_v40 }
0x123d   : > { %v5254_v51 = vmul.f32 %v2935_v53, %v5018_v56  ;;  %v5257_v58 = vmul.f32 %v2936_v62, %v5021_v57  ;;  %3425 = vmatpush1.bf16.msra.mxu1 %v4604_v17 }
0x123e   : > { %3426 = vmatprep.subr.bf16.mxu1 %v4609_v18 }
0x123f   : > { %v2939_v61 = vmul.f32 %v5254_v51, %v5254_v51  ;;  %v2940_v63 = vmul.f32 %v5257_v58, %v5257_v58 }
0x1241   : > { %v2941_v2 = vadd.f32 %v2940_v63, %v2939_v61  ;;  %3427 = vmatpush1.bf16.msra.mxu1 %v4607_v1  ;;  %v2966_v61 = vrot.slane %v5201_v5, %v5142_v0  ;;  %v2962_v63 = vrot.slane %v5191_v47, %v5142_v0  ;;  %v3011_v0 = vrot.slane %v5201_v5, %v5163_v49  ;;  %v4008_v49 = vld [vmem:[%s5314_s6 + $0x38] ss:$0 sm:$0xff] }
0x1242   : > { %3428 = vmatprep.subr.bf16.mxu1 %v4612_v19 }
0x1243   : > { %2942 = vadd.xlane.f32.xlu1 %v2941_v2 }
0x1245   : > { %3429 = vmatpush1.bf16.msra.mxu1 %v4610_v20 }
0x1246   : > { %3430 = vmatprep.subr.bf16.mxu1 %v4615_v46 }
0x1249   : > { %3431 = vmatpush1.bf16.msra.mxu1 %v4613_v22 }
0x124a   : > { %3432 = vmatprep.subr.bf16.mxu1 %v4618_v30 }
0x124d   : > { %3433 = vmatpush1.bf16.msra.mxu1 %v4616_v3 }
0x124e   : > { %3434 = vmatprep.subr.bf16.mxu1 %v4621_v31 }
0x1251   : > { %3435 = vmatpush1.bf16.msra.mxu1 %v4619_v32 }
0x1252   : > { %3436 = vmatprep.subr.bf16.mxu1 %v4624_v54 }
0x1255   : > { %3437 = vmatpush1.bf16.msra.mxu1 %v4622_v11 }
0x1256   : > { %3438 = vmatprep.subr.bf16.mxu1 %v4627_v10 }
0x1259   : > { %3439 = vmatpush1.bf16.msra.mxu1 %v4625_v33 }
0x125a   : > { %3440 = vmatprep.subr.bf16.mxu1 %v4630_v34 }
0x125d   : > { %3441 = vmatpush1.bf16.msra.mxu1 %v4628_v35 }
0x125e   : > { %3442 = vmatprep.subr.bf16.mxu1 %v4633_v59 }
0x1261   : > { %3443 = vmatpush1.bf16.msra.mxu1 %v4631_v36  ;;  %v3461_v36 = vld [vmem:[#allocation7] sm:$0xf] }
0x1262   : > { %3444 = vmatprep.subr.bf16.mxu1 %v4636_v43  ;;  %v3484_v43 = vrot.slane %v3461_v36, %v5038_v24 }
0x1265   : > { %3445 = vmatpush1.bf16.msra.mxu1 %v4634_v28  ;;  %v3488_v28 = vrot.slane %v3461_v36, %v5080_v52 }
0x1266   : > { %3446 = vmatprep.subr.bf16.mxu1 %v4639_v21 }
0x1269   : > { %3447 = vmatpush1.bf16.msra.mxu1 %v4637_v6 }
0x12d0   : > { %v2943_v29 = vpop.xlane.xlu1 %2942 }
0x12d1   : > { %v2944_v44 = vmul.f32 0.03125, %v2943_v29  ;;  %v3504_v29 = vrot.slane %v3461_v36, %v5051_v27 }
0x12d3   : > { %v2945_v45 = vadd.f32 1e-08, %v2944_v44  ;;  %v3498_v44 = vrot.slane %v3488_v28, %v5038_v24 }
0x12d5   : > { %4665 = vrsqrt.f32 %v2945_v45 }
0x12df   : > { %v4666_v16 = vpop.eup %4665 }
0x12e0   : > { %v2947_v53 = vmul.f32 %v4666_v16, %v5254_v51  ;;  %v2948_v62 = vmul.f32 %v4666_v16, %v5257_v58  ;;  %v4642_v51 = vld [vmem:[#allocation6 + $0x9f4] ss:$8 sps:$4 sm:$0xff]   ;;  %v4640_v58 = vld [vmem:[#allocation6 + $0x9f0] ss:$8 sps:$4 sm:$0xff]   ;;  %v3514_v16 = vrot.slane %v3504_v29, %v5051_v27 }
0x12e1   : > { %3448 = vmatprep.subr.bf16.mxu1 %v4642_v51 }
0x12e2   : > { %v2958_v2 = vmul.f32 %v2956_v48, %v2948_v62  ;;  %v2957_v42 = vmul.f32 %v2952_v50, %v2947_v53  ;;  %3449 = vmatpush1.bf16.msra.mxu1 %v4640_v58  ;;  %v3528_v62 = vld [vmem:[%s392_s22] sm:$0xff] }
0x12e4   : > { %v2968_v39 = vadd.f32 %v2966_v61, %v2958_v2  ;;  %v2967_v4 = vadd.f32 %v2962_v63, %v2957_v42  ;;  %v3529_v61 = vld [vmem:[%s392_s22 + $0x8] sm:$0xff] }
0x12e5   : > { %v3522_v63 = vld [vmem:[%s387_s17 + $0x8] sm:$0xff] }
0x12e6   : > { %v3003_v7 = vpack.c.bf16 %v2968_v39, %v2968_v39  ;;  %v3002_v23 = vpack.c.bf16 %v2967_v4, %v2967_v4 }
0x12e8   : > { %3204 = vmatprep.mubr.bf16.mxu0 %v3003_v7 }
0x12e9   : > { %3205 = vmatmul.mubr.bf16.vlgmr.msra.gmra.mrb[32].mxu0 %v3002_v23 }
0x13bc   : > { %v3206_v25 = vpop.f32.mrb[32].mxu0 }
0x13bd   : > { %v3207_v8 = vadd.f32 %v3206_v25, %v3007_v26  ;;  %v3208_v9 = vpop.f32.mrb[33].mxu0 }
0x13be   : > { %v3209_v38 = vadd.f32 %v3208_v9, %v3011_v0  ;;  %v3210_v60 = vpop.f32.mrb[34].mxu0 }
0x13bf   : > { %v3213_v55 = vmax.f32 %v3207_v8, 0.0  ;;  %v3211_v37 = vpop.f32.mrb[35].mxu0 }
0x13c0   : > { %v3214_v12 = vmax.f32 %v3209_v38, 0.0 }
0x13c1   : > { %v3248_v14 = vpack.c.bf16 %v3213_v55, %v3213_v55 }
0x13c2   : > { %v3249_v13 = vpack.c.bf16 %v3214_v12, %v3214_v12 }
0x13c4   : > { %3450 = vmatprep.mubr.bf16.mxu1 %v3249_v13 }
0x13c5   : > { %3451 = vmatmul.mubr.bf16.vlgmr.msra.gmra.mrb[32].mxu1 %v3248_v14 }
0x1498   : > { %v3452_v47 = vpop.f32.mrb[32].mxu1 }
0x1499   : > { %v3453_v5 = vadd.f32 %v4007_v15, %v3452_v47  ;;  %v3454_v40 = vpop.f32.mrb[33].mxu1 }
0x149a   : > { %v3455_v17 = vadd.f32 %v4008_v49, %v3454_v40  ;;  %v3456_v18 = vpop.f32.mrb[34].mxu1 }
0x149b   : > { %v3459_v1 = vadd.f32 %v3453_v5, %v2967_v4  ;;  %v3457_v19 = vpop.f32.mrb[35].mxu1 }
0x149c   : > { %v3460_v20 = vadd.f32 %v3455_v17, %v2968_v39 }
0x149e   : > { %v3462_v46 = vadd.f32 %v3460_v20, %v3459_v1 }
0x14a0   : > { %3463 = vadd.xlane.f32.xlu0 %v3462_v46 }
0x152d   : > { %v3464_v22 = vpop.xlane.xlu0 %3463 }
0x152e   : > { %v3465_v30 = vmul.f32 0.03125, %v3464_v22 }
0x1530   : > { %v3466_v3 = vsub.f32 %v3459_v1, %v3465_v30  ;;  %v3467_v31 = vsub.f32 %v3460_v20, %v3465_v30 }
0x1532   : > { %v3468_v32 = vmul.f32 %v3466_v3, %v5018_v56  ;;  %v3469_v54 = vmul.f32 %v3467_v31, %v5021_v57  ;;  %v3508_v56 = vrot.slane %v3461_v36, %v5070_v41  ;;  %v3494_v57 = vrot.slane %v3484_v43, %v5038_v24  ;;  %v3521_v24 = vld [vmem:[%s387_s17] sm:$0xff] }
0x1534   : > { %v3470_v11 = vmul.f32 %v3468_v32, %v3468_v32  ;;  %v3471_v10 = vmul.f32 %v3469_v54, %v3469_v54  ;;  %v3518_v53 = vrot.slane %v3508_v56, %v5051_v27 }
0x1536   : > { %v3472_v33 = vadd.f32 %v3471_v10, %v3470_v11 }
0x1538   : > { %3473 = vadd.xlane.f32.xlu1 %v3472_v33 }
0x15c5   : > { %v3474_v34 = vpop.xlane.xlu1 %3473 }
0x15c6   : > { %v3475_v35 = vmul.f32 0.03125, %v3474_v34 }
0x15c8   : > { %v3476_v59 = vadd.f32 1e-08, %v3475_v35 }
0x15ca   : > { %4667 = vrsqrt.f32 %v3476_v59 }
0x15d4   : > { %v4668_v45 = vpop.eup %4667 }
0x15d5   : > { %v3478_v48 = vmul.f32 %v4668_v45, %v3468_v32  ;;  %v3479_v50 = vmul.f32 %v4668_v45, %v3469_v54 }
0x15d7   : > { %v3499_v41 = vmul.f32 %v3494_v57, %v3478_v48  ;;  %v3500_v52 = vmul.f32 %v3498_v44, %v3479_v50 }
0x15d9   : > { %v3519_v2 = vadd.f32 %v3514_v16, %v3499_v41  ;;  %v3520_v42 = vadd.f32 %v3518_v53, %v3500_v52 }
0x15db   : > { %v3530_v39 = vmul.f32 %v3528_v62, %v3519_v2  ;;  %v3531_v4 = vmul.f32 %v3529_v61, %v3520_v42  ;;  %v3523_v7 = vmul.f32 %v3521_v24, %v3519_v2  ;;  %v3524_v23 = vmul.f32 %v3522_v63, %v3520_v42 }
0x15dd   : > { %v3532_v21 = vadd.f32 %v3531_v4, %v3530_v39  ;;  %v3525_v6 = vadd.f32 %v3524_v23, %v3523_v7 }
0x15df   : > { %3533 = vadd.xlane.f32.xlu1 %v3532_v21  ;;  %3526 = vadd.xlane.f32.xlu0 %v3525_v6 }
0x166c   : > { %v3534_v27 = vpop.xlane.xlu1 %3533  ;;  %v3527_v51 = vpop.xlane.xlu0 %3526 }
0x166d   : > { %v3536_v58 = vsel %vm3535_vm6, %v3527_v51, %v3534_v27 }
0x166e   : > { %3537 = vxpose.xlu0.b32.start.end [1/1] (short) (narrow) %v3536_v58, 8 }
0x16ee   : > { %v3553_v26 = vpop.trf.xlu0 }
0x16ef   : > { %3570 = vst.msk [vmem:[%s396_s20] sm:$0x3] %vm3569_vm7, %v3553_v26 }
0x16f0 PF: > { %s21_s27 = sadd.s32 1, %s4802_s27  }
0x16f1   : > { %p18_p6 = scmp.ge.s32.totalorder %s21_s27, 4  }
0x16f3   :  { %20 = sbr.rel (!%p18_p6) target bundleno = 3 (0x3), region = 115 }
0x16fa   :  { %3590 = vsyncpa [#allocation3], 1 }
0x16fb   :  { %3592 = vsyncpa [#allocation3 + $0x1], 1 }
0x16fc   :  { %3593 = vsyncpa [#allocation5], 1 }
0x16fd   :  { %3594 = vsyncpa [#allocation8], 1 }

</bundles_post_ra>
